<compile_context>
chip_gen: v7x
topology: tpu7x:2x2x1
jax: 0.10.0
libtpu: 0.0.40
codegen_flags: <defaults>
</compile_context>

<pallas_src>
import functools

import jax
import jax.numpy as jnp
import numpy as np
from jax.experimental import pallas as pl
from jax.experimental.pallas import tpu as pltpu


# ----------------------------------------------------------------------------
# Fused kernel
# ----------------------------------------------------------------------------
def _make_fused_kernel(K, L, bt, cols, cfg):
    """cfg: tuple of (cin, cmid, cout, dilation, has_downsample) per block."""

    def kernel(*refs):
        it = iter(refs)
        x_ref = next(it)                     # (Cin, cols)  f32  activations
        t_ref = next(it)                     # (1, cols)    int32 t-within-sequence

        t_row = t_ref[...]
        mask_cache = {}

        def causal_mask(delta):
            # Hoisted: one compare per distinct delta for the whole network.
            if delta not in mask_cache:
                mask_cache[delta] = t_row >= delta
            return mask_cache[delta]

        def causal_taps(z, dilation):
            # tap k = z shifted right by delta=(K-1-k)*dilation along lanes,
            # zeroed where t < delta (also kills cross-batch / pad wrap-around).
            taps = []
            for k in range(K):
                delta = (K - 1 - k) * dilation
                if delta == 0:
                    taps.append(z)
                elif delta >= L:
                    taps.append(None)        # fully out of range -> zero tap
                else:
                    rolled = pltpu.roll(z, shift=delta, axis=1)
                    taps.append(jnp.where(causal_mask(delta), rolled, 0.0))
            return taps

        def contract(taps, w_ref, cin, cout):
            # out[co, r] = sum_{k,ci} W[co, k*cin + ci] * taps[k][ci, r]
            if min(cin, cout) >= 64:
                # Wide-channel config: one fused-tap bf16 MXU matmul.
                pieces = [t if t is not None else jnp.zeros((cin, cols), jnp.float32)
                          for t in taps]
                stack = jnp.concatenate(pieces, axis=0) if len(pieces) > 1 else pieces[0]
                return jnp.dot(w_ref[...].astype(jnp.bfloat16),
                               stack.astype(jnp.bfloat16),
                               preferred_element_type=jnp.float32)
            # Narrow-channel config (this model): f32 VPU outer-product MACs
            # over lane-dense (cout, cols) strips; MXU stays idle.
            w = w_ref[...]                    # (cout, K*cin)
            acc = None
            for k, tap in enumerate(taps):
                if tap is None:
                    continue
                for ci in range(cin):
                    j = k * cin + ci
                    contrib = w[:, j:j + 1] * tap[ci:ci + 1, :]   # (cout, cols)
                    acc = contrib if acc is None else acc + contrib
            return acc

        h = x_ref[...]
        for (cin, cm, co, dil, has_ds) in cfg:
            w1 = next(it); b1 = next(it); w2 = next(it); b2 = next(it)
            if has_ds:
                wd = next(it); bd = next(it)
            # TODO(synk): dropout is eval-mode identity (no train-mode mask).
            h1 = jnp.maximum(contract(causal_taps(h, dil), w1, cin, cm) + b1[...], 0.0)
            h2 = jnp.maximum(contract(causal_taps(h1, dil), w2, cm, co) + b2[...], 0.0)
            res = (contract([h], wd, cin, co) + bd[...]) if has_ds else h
            h = jnp.maximum(h2 + res, 0.0)

        lw_ref = next(it)                    # (L, out)
        lb_ref = next(it)                    # (1, out)
        o_ref = next(it)                     # (bt, out)
        h_sc = next(it)                      # VMEM (1, cols) scratch
        y_sc = next(it)                      # VMEM (bt, L)  scratch

        # Head: C_last == 1, so h is (1, cols). Repack each batch's L-lane span
        # into a (bt, L) tile (via VMEM scratch) and hit the MXU once with a
        # direct (bt, L) x (L, out) matmul — no selector matmul, no tiled lin_w.
        h_sc[...] = h
        for b in range(bt):
            y_sc[b:b + 1, :] = h_sc[:, b * L:(b + 1) * L]
        o_ref[...] = (jnp.dot(y_sc[...], lw_ref[...],
                              preferred_element_type=jnp.float32) + lb_ref[...])

    return kernel


# ----------------------------------------------------------------------------
# Wrapper
# ----------------------------------------------------------------------------
@functools.partial(jax.jit, static_argnames=("kernel_size",))
def tcn_model_forward(x_ncl, blocks, lin_w, lin_b, *, kernel_size):
    """x_ncl: PyTorch-style (B, C_in, L) -> (B, output_size)."""
    B, c_in, L = x_ncl.shape
    out_dim = lin_w.shape[1]
    K = kernel_size

    # ---- batch tiling -------------------------------------------------------
    # v7x has 2 TensorCores: give the "parallel" grid 2 tiles whenever the
    # split keeps every block lane/sublane aligned; otherwise one big tile
    # (v5e/v6e are single-TC and ~0.35us/grid-step favors fewer, bigger tiles).
    if B % 2 == 0 and (B // 2) % 8 == 0 and ((B // 2) * L) % 128 == 0:
        n_tiles = 2
    else:
        n_tiles = 1
    bt = B // n_tiles
    cols = bt * L                                       # lanes holding real data
    cols_pad = cols if n_tiles > 1 else ((cols + 127) // 128) * 128

    # ---- activations: channels on sublanes, batch*seq on lanes --------------
    x2d = jnp.transpose(x_ncl.astype(jnp.float32), (1, 0, 2)).reshape(c_in, B * L)
    if cols_pad != cols:
        x2d = jnp.pad(x2d, ((0, 0), (0, cols_pad - cols)))

    # Lane-dense (1, cols) position row; -1 on pad lanes so every causal mask
    # zeroes anything rolled in from them.
    t_np = np.full((1, cols_pad), -1, dtype=np.int32)
    t_np[0, :cols] = np.tile(np.arange(L, dtype=np.int32), bt)
    t_idx = jnp.asarray(t_np)

    args = [x2d, t_idx]
    in_specs = [
        pl.BlockSpec((c_in, cols_pad), lambda i: (0, i)),
        pl.BlockSpec((1, cols_pad), lambda i: (0, 0)),
    ]

    cfg = []
    cin = c_in
    for i, p in enumerate(blocks):
        cm = p["w1"].shape[2]
        co = p["w2"].shape[2]
        has_ds = "wd" in p
        # (K, Cin, Cout) -> (Cout, K*Cin); column k*Cin + ci <-> tap k, channel ci.
        w1 = jnp.transpose(p["w1"], (2, 0, 1)).reshape(cm, K * cin).astype(jnp.float32)
        w2 = jnp.transpose(p["w2"], (2, 0, 1)).reshape(co, K * cm).astype(jnp.float32)
        b1 = jnp.transpose(p["b1"]).astype(jnp.float32)           # (cm, 1)
        b2 = jnp.transpose(p["b2"]).astype(jnp.float32)           # (co, 1)
        args += [w1, b1, w2, b2]
        in_specs += [
            pl.BlockSpec((cm, K * cin), lambda i: (0, 0)),
            pl.BlockSpec((cm, 1), lambda i: (0, 0)),
            pl.BlockSpec((co, K * cm), lambda i: (0, 0)),
            pl.BlockSpec((co, 1), lambda i: (0, 0)),
        ]
        if has_ds:
            args += [jnp.transpose(p["wd"]).astype(jnp.float32),  # (co, cin)
                     jnp.transpose(p["bd"]).astype(jnp.float32)]  # (co, 1)
            in_specs += [
                pl.BlockSpec((co, cin), lambda i: (0, 0)),
                pl.BlockSpec((co, 1), lambda i: (0, 0)),
            ]
        cfg.append((cin, cm, co, 2 ** i, has_ds))
        cin = co

    # PyTorch head relies on num_channels[-1] == 1 (y1.squeeze() -> (B, L)).
    assert cin == 1, "TCNModel head requires num_channels[-1] == 1"

    args += [lin_w.astype(jnp.float32), lin_b.astype(jnp.float32)]
    in_specs += [
        pl.BlockSpec((L, out_dim), lambda i: (0, 0)),
        pl.BlockSpec((1, out_dim), lambda i: (0, 0)),
    ]

    # ---- VMEM budget: double-buffered inputs + live activation tiles --------
    in_bytes = sum(int(np.prod(a.shape)) * np.dtype(a.dtype).itemsize for a in args)
    max_c = max([c_in] + [c[1] for c in cfg] + [c[2] for c in cfg])
    est = 2 * in_bytes + 4 * 4 * (K + 2) * max_c * cols_pad + 4 * B * out_dim
    vmem_limit = int(min(48 * 2 ** 20, max(16 * 2 ** 20, 4 * est)))  # v7x-safe cap

    return pl.pallas_call(
        _make_fused_kernel(K, L, bt, cols_pad, tuple(cfg)),
        grid=(n_tiles,),
        in_specs=in_specs,
        out_specs=pl.BlockSpec((bt, out_dim), lambda i: (i, 0)),
        out_shape=jax.ShapeDtypeStruct((B, out_dim), jnp.float32),
        scratch_shapes=[pltpu.VMEM((1, cols_pad), jnp.float32),
                        pltpu.VMEM((bt, L), jnp.float32)],
        compiler_params=pltpu.CompilerParams(
            dimension_semantics=("parallel",),
            vmem_limit_bytes=vmem_limit),
    )(*args)


# ----------------------------------------------------------------------------
# Pure-JAX f32 reference (ground truth)
# ----------------------------------------------------------------------------
@functools.partial(jax.jit, static_argnames=("kernel_size",))
def ref_forward(x_ncl, blocks, lin_w, lin_b, *, kernel_size):
    K = kernel_size
    h = jnp.transpose(x_ncl, (0, 2, 1)).astype(jnp.float32)       # (B, L, Cin)
    L = h.shape[1]
    for i, p in enumerate(blocks):
        d = 2 ** i
        pad = (K - 1) * d

        def conv(z, w, b):
            zp = jnp.pad(z, ((0, 0), (pad, 0), (0, 0)))
            acc = None
            for k in range(K):
                delta = (K - 1 - k) * d
                tap = zp[:, pad - delta: pad - delta + L, :]
                t = jnp.einsum("blc,co->blo", tap, w[k], precision="highest")
                acc = t if acc is None else acc + t
            return acc + b

        h1 = jnp.maximum(conv(h, p["w1"], p["b1"]), 0.0)
        h2 = jnp.maximum(conv(h1, p["w2"], p["b2"]), 0.0)
        if "wd" in p:
            res = jnp.einsum("blc,co->blo", h, p["wd"], precision="highest") + p["bd"]
        else:
            res = h
        h = jnp.maximum(h2 + res, 0.0)
    y = h[..., 0]                                                 # (B, L); C_last == 1
    return jnp.dot(y, lin_w, precision="highest") + lin_b


# ----------------------------------------------------------------------------
# Deterministic parameter construction + demo
# ----------------------------------------------------------------------------
def init_params(key, input_size, output_size, num_channels, kernel_size,
                sequence_length):
    blocks = []
    cin = input_size
    for cout in num_channels:
        key, k1, k2, k3, k4, k5, k6 = jax.random.split(key, 7)
        p = {
            "w1": 0.1 * jax.random.normal(k1, (kernel_size, cin, cout), jnp.float32),
            "b1": 0.1 * jax.random.normal(k2, (1, cout), jnp.float32),
            "w2": 0.1 * jax.random.normal(k3, (kernel_size, cout, cout), jnp.float32),
            "b2": 0.1 * jax.random.normal(k4, (1, cout), jnp.float32),
        }
        if cin != cout:  # nn.Conv1d(cin, cout, 1) downsample
            p["wd"] = 0.1 * jax.random.normal(k5, (cin, cout), jnp.float32)
            p["bd"] = 0.1 * jax.random.normal(k6, (1, cout), jnp.float32)
        blocks.append(p)
        cin = cout
    key, kw, kb = jax.random.split(key, 3)
    lin_w = 0.1 * jax.random.normal(kw, (sequence_length, output_size), jnp.float32)
    lin_b = 0.1 * jax.random.normal(kb, (1, output_size), jnp.float32)
    return blocks, lin_w, lin_b


if __name__ == "__main__":
    # TCNModel(input_size=4, output_size=3, num_channels=[8, 8, 1],
    #          kernel_size=2, dropout=0.0, sequence_length=8)
    B, input_size, output_size = 2, 4, 3
    num_channels = [8, 8, 1]
    kernel_size = 2
    sequence_length = 8

    key = jax.random.PRNGKey(0)
    key, kx = jax.random.split(key)
    x = jax.random.normal(kx, (B, input_size, sequence_length), jnp.float32)

    blocks, lin_w, lin_b = init_params(
        key, input_size, output_size, num_channels, kernel_size, sequence_length)

    out = tcn_model_forward(x, blocks, lin_w, lin_b, kernel_size=kernel_size)
    jax.block_until_ready(out)
    assert out.shape == (B, output_size)

    # Correctness vs. pure-f32 reference.  For these channel widths the kernel
    # uses the f32 VPU contraction path, so the tolerance can be tight (wide
    # channel configs would route to the bf16 MXU path and need ~2e-2).
    # NOTE(B==1 edge case): PyTorch's y1.squeeze() would also drop the batch
    # dim when B == 1; not reproduced (we always return (B, out)).
    ref = ref_forward(x, blocks, lin_w, lin_b, kernel_size=kernel_size)
    err = float(jnp.max(jnp.abs(out - ref)))
    assert err < 2e-3, f"kernel/reference mismatch: max abs err {err}"

    print("KERNEL_OK")
</pallas_src>

<mosaic_0001>
module attributes {stable_mosaic.version = 11 : i64} {
  func.func @kernel(%arg0: i32, %arg1: memref<4x128xf32, #tpu.memory_space<vmem>>, %arg2: memref<1x128xi32, #tpu.memory_space<vmem>>, %arg3: memref<8x8xf32, #tpu.memory_space<vmem>>, %arg4: memref<8x1xf32, #tpu.memory_space<vmem>>, %arg5: memref<8x16xf32, #tpu.memory_space<vmem>>, %arg6: memref<8x1xf32, #tpu.memory_space<vmem>>, %arg7: memref<8x4xf32, #tpu.memory_space<vmem>>, %arg8: memref<8x1xf32, #tpu.memory_space<vmem>>, %arg9: memref<8x16xf32, #tpu.memory_space<vmem>>, %arg10: memref<8x1xf32, #tpu.memory_space<vmem>>, %arg11: memref<8x16xf32, #tpu.memory_space<vmem>>, %arg12: memref<8x1xf32, #tpu.memory_space<vmem>>, %arg13: memref<1x16xf32, #tpu.memory_space<vmem>>, %arg14: memref<1x1xf32, #tpu.memory_space<vmem>>, %arg15: memref<1x2xf32, #tpu.memory_space<vmem>>, %arg16: memref<1x1xf32, #tpu.memory_space<vmem>>, %arg17: memref<1x8xf32, #tpu.memory_space<vmem>>, %arg18: memref<1x1xf32, #tpu.memory_space<vmem>>, %arg19: memref<8x3xf32, #tpu.memory_space<vmem>>, %arg20: memref<1x3xf32, #tpu.memory_space<vmem>>, %arg21: memref<2x3xf32, #tpu.memory_space<vmem>>, %arg22: memref<1x128xf32, #tpu.memory_space<vmem>>, %arg23: memref<2x8xf32, #tpu.memory_space<vmem>>) attributes {dimension_semantics = [#tpu.dimension_semantics<parallel>], iteration_bounds = array<i64: 1>, scalar_prefetch = 0 : i64, scratch_operands = 2 : i64, tpu.core_type = #tpu.core_type<tc>, window_params = [{transform_indices = @transform_0, window_bounds = array<i64: 4, 128>}, {pipeline_mode = #tpu.pipeline_mode<synchronous>, transform_indices = @transform_1, window_bounds = array<i64: 1, 128>}, {pipeline_mode = #tpu.pipeline_mode<synchronous>, transform_indices = @transform_2, window_bounds = array<i64: 8, 8>}, {pipeline_mode = #tpu.pipeline_mode<synchronous>, transform_indices = @transform_3, window_bounds = array<i64: 8, 1>}, {pipeline_mode = #tpu.pipeline_mode<synchronous>, transform_indices = @transform_4, window_bounds = array<i64: 8, 16>}, {pipeline_mode = #tpu.pipeline_mode<synchronous>, transform_indices = @transform_5, window_bounds = array<i64: 8, 1>}, {pipeline_mode = #tpu.pipeline_mode<synchronous>, transform_indices = @transform_6, window_bounds = array<i64: 8, 4>}, {pipeline_mode = #tpu.pipeline_mode<synchronous>, transform_indices = @transform_7, window_bounds = array<i64: 8, 1>}, {pipeline_mode = #tpu.pipeline_mode<synchronous>, transform_indices = @transform_8, window_bounds = array<i64: 8, 16>}, {pipeline_mode = #tpu.pipeline_mode<synchronous>, transform_indices = @transform_9, window_bounds = array<i64: 8, 1>}, {pipeline_mode = #tpu.pipeline_mode<synchronous>, transform_indices = @transform_10, window_bounds = array<i64: 8, 16>}, {pipeline_mode = #tpu.pipeline_mode<synchronous>, transform_indices = @transform_11, window_bounds = array<i64: 8, 1>}, {pipeline_mode = #tpu.pipeline_mode<synchronous>, transform_indices = @transform_12, window_bounds = array<i64: 1, 16>}, {pipeline_mode = #tpu.pipeline_mode<synchronous>, transform_indices = @transform_13, window_bounds = array<i64: 1, 1>}, {pipeline_mode = #tpu.pipeline_mode<synchronous>, transform_indices = @transform_14, window_bounds = array<i64: 1, 2>}, {pipeline_mode = #tpu.pipeline_mode<synchronous>, transform_indices = @transform_15, window_bounds = array<i64: 1, 1>}, {pipeline_mode = #tpu.pipeline_mode<synchronous>, transform_indices = @transform_16, window_bounds = array<i64: 1, 8>}, {pipeline_mode = #tpu.pipeline_mode<synchronous>, transform_indices = @transform_17, window_bounds = array<i64: 1, 1>}, {pipeline_mode = #tpu.pipeline_mode<synchronous>, transform_indices = @transform_18, window_bounds = array<i64: 8, 3>}, {pipeline_mode = #tpu.pipeline_mode<synchronous>, transform_indices = @transform_19, window_bounds = array<i64: 1, 3>}, {transform_indices = @transform_20, window_bounds = array<i64: 2, 3>}]} {
    %c0 = arith.constant 0 : index
    %c0_0 = arith.constant 0 : index
    %0 = vector.load %arg2[%c0, %c0_0] : memref<1x128xi32, #tpu.memory_space<vmem>>, vector<1x128xi32>
    %c0_1 = arith.constant 0 : index
    %c0_2 = arith.constant 0 : index
    %1 = vector.load %arg1[%c0_1, %c0_2] : memref<4x128xf32, #tpu.memory_space<vmem>>, vector<4x128xf32>
    %c1_i32 = arith.constant 1 : i32
    %2 = tpu.dynamic_rotate %1 by %c1_i32 dim 1 : vector<4x128xf32>, i32 -> vector<4x128xf32>
    %c1_i32_3 = arith.constant 1 : i32
    %3 = vector.broadcast %c1_i32_3 : i32 to vector<1x128xi32>
    %4 = arith.cmpi sge, %0, %3 : vector<1x128xi32>
    %cst = arith.constant 0.000000e+00 : f32
    %5 = vector.shape_cast %4 : vector<1x128xi1> to vector<1x128xi1>
    %6 = vector.broadcast %5 : vector<1x128xi1> to vector<4x128xi1>
    %7 = vector.broadcast %cst : f32 to vector<4x128xf32>
    %8 = arith.select %6, %2, %7 : vector<4x128xi1>, vector<4x128xf32>
    %c0_4 = arith.constant 0 : index
    %c0_5 = arith.constant 0 : index
    %9 = vector.load %arg3[%c0_4, %c0_5] : memref<8x8xf32, #tpu.memory_space<vmem>>, vector<8x8xf32>
    %10 = vector.extract_strided_slice %9 {offsets = [0, 0], sizes = [8, 1], strides = [1, 1]} : vector<8x8xf32> to vector<8x1xf32>
    %11 = vector.extract_strided_slice %8 {offsets = [0, 0], sizes = [1, 128], strides = [1, 1]} : vector<4x128xf32> to vector<1x128xf32>
    %12 = vector.broadcast %10 : vector<8x1xf32> to vector<8x128xf32>
    %13 = vector.broadcast %11 : vector<1x128xf32> to vector<8x128xf32>
    %14 = arith.mulf %12, %13 : vector<8x128xf32>
    %15 = vector.extract_strided_slice %9 {offsets = [0, 1], sizes = [8, 1], strides = [1, 1]} : vector<8x8xf32> to vector<8x1xf32>
    %16 = vector.extract_strided_slice %8 {offsets = [1, 0], sizes = [1, 128], strides = [1, 1]} : vector<4x128xf32> to vector<1x128xf32>
    %17 = vector.broadcast %15 : vector<8x1xf32> to vector<8x128xf32>
    %18 = vector.broadcast %16 : vector<1x128xf32> to vector<8x128xf32>
    %19 = arith.mulf %17, %18 : vector<8x128xf32>
    %20 = arith.addf %14, %19 : vector<8x128xf32>
    %21 = vector.extract_strided_slice %9 {offsets = [0, 2], sizes = [8, 1], strides = [1, 1]} : vector<8x8xf32> to vector<8x1xf32>
    %22 = vector.extract_strided_slice %8 {offsets = [2, 0], sizes = [1, 128], strides = [1, 1]} : vector<4x128xf32> to vector<1x128xf32>
    %23 = vector.broadcast %21 : vector<8x1xf32> to vector<8x128xf32>
    %24 = vector.broadcast %22 : vector<1x128xf32> to vector<8x128xf32>
    %25 = arith.mulf %23, %24 : vector<8x128xf32>
    %26 = arith.addf %20, %25 : vector<8x128xf32>
    %27 = vector.extract_strided_slice %9 {offsets = [0, 3], sizes = [8, 1], strides = [1, 1]} : vector<8x8xf32> to vector<8x1xf32>
    %28 = vector.extract_strided_slice %8 {offsets = [3, 0], sizes = [1, 128], strides = [1, 1]} : vector<4x128xf32> to vector<1x128xf32>
    %29 = vector.broadcast %27 : vector<8x1xf32> to vector<8x128xf32>
    %30 = vector.broadcast %28 : vector<1x128xf32> to vector<8x128xf32>
    %31 = arith.mulf %29, %30 : vector<8x128xf32>
    %32 = arith.addf %26, %31 : vector<8x128xf32>
    %33 = vector.extract_strided_slice %9 {offsets = [0, 4], sizes = [8, 1], strides = [1, 1]} : vector<8x8xf32> to vector<8x1xf32>
    %34 = vector.extract_strided_slice %1 {offsets = [0, 0], sizes = [1, 128], strides = [1, 1]} : vector<4x128xf32> to vector<1x128xf32>
    %35 = vector.broadcast %33 : vector<8x1xf32> to vector<8x128xf32>
    %36 = vector.broadcast %34 : vector<1x128xf32> to vector<8x128xf32>
    %37 = arith.mulf %35, %36 : vector<8x128xf32>
    %38 = arith.addf %32, %37 : vector<8x128xf32>
    %39 = vector.extract_strided_slice %9 {offsets = [0, 5], sizes = [8, 1], strides = [1, 1]} : vector<8x8xf32> to vector<8x1xf32>
    %40 = vector.extract_strided_slice %1 {offsets = [1, 0], sizes = [1, 128], strides = [1, 1]} : vector<4x128xf32> to vector<1x128xf32>
    %41 = vector.broadcast %39 : vector<8x1xf32> to vector<8x128xf32>
    %42 = vector.broadcast %40 : vector<1x128xf32> to vector<8x128xf32>
    %43 = arith.mulf %41, %42 : vector<8x128xf32>
    %44 = arith.addf %38, %43 : vector<8x128xf32>
    %45 = vector.extract_strided_slice %9 {offsets = [0, 6], sizes = [8, 1], strides = [1, 1]} : vector<8x8xf32> to vector<8x1xf32>
    %46 = vector.extract_strided_slice %1 {offsets = [2, 0], sizes = [1, 128], strides = [1, 1]} : vector<4x128xf32> to vector<1x128xf32>
    %47 = vector.broadcast %45 : vector<8x1xf32> to vector<8x128xf32>
    %48 = vector.broadcast %46 : vector<1x128xf32> to vector<8x128xf32>
    %49 = arith.mulf %47, %48 : vector<8x128xf32>
    %50 = arith.addf %44, %49 : vector<8x128xf32>
    %51 = vector.extract_strided_slice %9 {offsets = [0, 7], sizes = [8, 1], strides = [1, 1]} : vector<8x8xf32> to vector<8x1xf32>
    %52 = vector.extract_strided_slice %1 {offsets = [3, 0], sizes = [1, 128], strides = [1, 1]} : vector<4x128xf32> to vector<1x128xf32>
    %53 = vector.broadcast %51 : vector<8x1xf32> to vector<8x128xf32>
    %54 = vector.broadcast %52 : vector<1x128xf32> to vector<8x128xf32>
    %55 = arith.mulf %53, %54 : vector<8x128xf32>
    %56 = arith.addf %50, %55 : vector<8x128xf32>
    %c0_6 = arith.constant 0 : index
    %c0_7 = arith.constant 0 : index
    %57 = vector.load %arg4[%c0_6, %c0_7] : memref<8x1xf32, #tpu.memory_space<vmem>>, vector<8x1xf32>
    %58 = vector.broadcast %57 : vector<8x1xf32> to vector<8x128xf32>
    %59 = arith.addf %56, %58 : vector<8x128xf32>
    %cst_8 = arith.constant 0.000000e+00 : f32
    %60 = vector.broadcast %cst_8 : f32 to vector<8x128xf32>
    %61 = arith.maximumf %59, %60 : vector<8x128xf32>
    %c1_i32_9 = arith.constant 1 : i32
    %62 = tpu.dynamic_rotate %61 by %c1_i32_9 dim 1 : vector<8x128xf32>, i32 -> vector<8x128xf32>
    %cst_10 = arith.constant 0.000000e+00 : f32
    %63 = vector.shape_cast %4 : vector<1x128xi1> to vector<1x128xi1>
    %64 = vector.broadcast %63 : vector<1x128xi1> to vector<8x128xi1>
    %65 = vector.broadcast %cst_10 : f32 to vector<8x128xf32>
    %66 = arith.select %64, %62, %65 : vector<8x128xi1>, vector<8x128xf32>
    %c0_11 = arith.constant 0 : index
    %c0_12 = arith.constant 0 : index
    %67 = vector.load %arg5[%c0_11, %c0_12] : memref<8x16xf32, #tpu.memory_space<vmem>>, vector<8x16xf32>
    %68 = vector.extract_strided_slice %67 {offsets = [0, 0], sizes = [8, 1], strides = [1, 1]} : vector<8x16xf32> to vector<8x1xf32>
    %69 = vector.extract_strided_slice %66 {offsets = [0, 0], sizes = [1, 128], strides = [1, 1]} : vector<8x128xf32> to vector<1x128xf32>
    %70 = vector.broadcast %68 : vector<8x1xf32> to vector<8x128xf32>
    %71 = vector.broadcast %69 : vector<1x128xf32> to vector<8x128xf32>
    %72 = arith.mulf %70, %71 : vector<8x128xf32>
    %73 = vector.extract_strided_slice %67 {offsets = [0, 1], sizes = [8, 1], strides = [1, 1]} : vector<8x16xf32> to vector<8x1xf32>
    %74 = vector.extract_strided_slice %66 {offsets = [1, 0], sizes = [1, 128], strides = [1, 1]} : vector<8x128xf32> to vector<1x128xf32>
    %75 = vector.broadcast %73 : vector<8x1xf32> to vector<8x128xf32>
    %76 = vector.broadcast %74 : vector<1x128xf32> to vector<8x128xf32>
    %77 = arith.mulf %75, %76 : vector<8x128xf32>
    %78 = arith.addf %72, %77 : vector<8x128xf32>
    %79 = vector.extract_strided_slice %67 {offsets = [0, 2], sizes = [8, 1], strides = [1, 1]} : vector<8x16xf32> to vector<8x1xf32>
    %80 = vector.extract_strided_slice %66 {offsets = [2, 0], sizes = [1, 128], strides = [1, 1]} : vector<8x128xf32> to vector<1x128xf32>
    %81 = vector.broadcast %79 : vector<8x1xf32> to vector<8x128xf32>
    %82 = vector.broadcast %80 : vector<1x128xf32> to vector<8x128xf32>
    %83 = arith.mulf %81, %82 : vector<8x128xf32>
    %84 = arith.addf %78, %83 : vector<8x128xf32>
    %85 = vector.extract_strided_slice %67 {offsets = [0, 3], sizes = [8, 1], strides = [1, 1]} : vector<8x16xf32> to vector<8x1xf32>
    %86 = vector.extract_strided_slice %66 {offsets = [3, 0], sizes = [1, 128], strides = [1, 1]} : vector<8x128xf32> to vector<1x128xf32>
    %87 = vector.broadcast %85 : vector<8x1xf32> to vector<8x128xf32>
    %88 = vector.broadcast %86 : vector<1x128xf32> to vector<8x128xf32>
    %89 = arith.mulf %87, %88 : vector<8x128xf32>
    %90 = arith.addf %84, %89 : vector<8x128xf32>
    %91 = vector.extract_strided_slice %67 {offsets = [0, 4], sizes = [8, 1], strides = [1, 1]} : vector<8x16xf32> to vector<8x1xf32>
    %92 = vector.extract_strided_slice %66 {offsets = [4, 0], sizes = [1, 128], strides = [1, 1]} : vector<8x128xf32> to vector<1x128xf32>
    %93 = vector.broadcast %91 : vector<8x1xf32> to vector<8x128xf32>
    %94 = vector.broadcast %92 : vector<1x128xf32> to vector<8x128xf32>
    %95 = arith.mulf %93, %94 : vector<8x128xf32>
    %96 = arith.addf %90, %95 : vector<8x128xf32>
    %97 = vector.extract_strided_slice %67 {offsets = [0, 5], sizes = [8, 1], strides = [1, 1]} : vector<8x16xf32> to vector<8x1xf32>
    %98 = vector.extract_strided_slice %66 {offsets = [5, 0], sizes = [1, 128], strides = [1, 1]} : vector<8x128xf32> to vector<1x128xf32>
    %99 = vector.broadcast %97 : vector<8x1xf32> to vector<8x128xf32>
    %100 = vector.broadcast %98 : vector<1x128xf32> to vector<8x128xf32>
    %101 = arith.mulf %99, %100 : vector<8x128xf32>
    %102 = arith.addf %96, %101 : vector<8x128xf32>
    %103 = vector.extract_strided_slice %67 {offsets = [0, 6], sizes = [8, 1], strides = [1, 1]} : vector<8x16xf32> to vector<8x1xf32>
    %104 = vector.extract_strided_slice %66 {offsets = [6, 0], sizes = [1, 128], strides = [1, 1]} : vector<8x128xf32> to vector<1x128xf32>
    %105 = vector.broadcast %103 : vector<8x1xf32> to vector<8x128xf32>
    %106 = vector.broadcast %104 : vector<1x128xf32> to vector<8x128xf32>
    %107 = arith.mulf %105, %106 : vector<8x128xf32>
    %108 = arith.addf %102, %107 : vector<8x128xf32>
    %109 = vector.extract_strided_slice %67 {offsets = [0, 7], sizes = [8, 1], strides = [1, 1]} : vector<8x16xf32> to vector<8x1xf32>
    %110 = vector.extract_strided_slice %66 {offsets = [7, 0], sizes = [1, 128], strides = [1, 1]} : vector<8x128xf32> to vector<1x128xf32>
    %111 = vector.broadcast %109 : vector<8x1xf32> to vector<8x128xf32>
    %112 = vector.broadcast %110 : vector<1x128xf32> to vector<8x128xf32>
    %113 = arith.mulf %111, %112 : vector<8x128xf32>
    %114 = arith.addf %108, %113 : vector<8x128xf32>
    %115 = vector.extract_strided_slice %67 {offsets = [0, 8], sizes = [8, 1], strides = [1, 1]} : vector<8x16xf32> to vector<8x1xf32>
    %116 = vector.extract_strided_slice %61 {offsets = [0, 0], sizes = [1, 128], strides = [1, 1]} : vector<8x128xf32> to vector<1x128xf32>
    %117 = vector.broadcast %115 : vector<8x1xf32> to vector<8x128xf32>
    %118 = vector.broadcast %116 : vector<1x128xf32> to vector<8x128xf32>
    %119 = arith.mulf %117, %118 : vector<8x128xf32>
    %120 = arith.addf %114, %119 : vector<8x128xf32>
    %121 = vector.extract_strided_slice %67 {offsets = [0, 9], sizes = [8, 1], strides = [1, 1]} : vector<8x16xf32> to vector<8x1xf32>
    %122 = vector.extract_strided_slice %61 {offsets = [1, 0], sizes = [1, 128], strides = [1, 1]} : vector<8x128xf32> to vector<1x128xf32>
    %123 = vector.broadcast %121 : vector<8x1xf32> to vector<8x128xf32>
    %124 = vector.broadcast %122 : vector<1x128xf32> to vector<8x128xf32>
    %125 = arith.mulf %123, %124 : vector<8x128xf32>
    %126 = arith.addf %120, %125 : vector<8x128xf32>
    %127 = vector.extract_strided_slice %67 {offsets = [0, 10], sizes = [8, 1], strides = [1, 1]} : vector<8x16xf32> to vector<8x1xf32>
    %128 = vector.extract_strided_slice %61 {offsets = [2, 0], sizes = [1, 128], strides = [1, 1]} : vector<8x128xf32> to vector<1x128xf32>
    %129 = vector.broadcast %127 : vector<8x1xf32> to vector<8x128xf32>
    %130 = vector.broadcast %128 : vector<1x128xf32> to vector<8x128xf32>
    %131 = arith.mulf %129, %130 : vector<8x128xf32>
    %132 = arith.addf %126, %131 : vector<8x128xf32>
    %133 = vector.extract_strided_slice %67 {offsets = [0, 11], sizes = [8, 1], strides = [1, 1]} : vector<8x16xf32> to vector<8x1xf32>
    %134 = vector.extract_strided_slice %61 {offsets = [3, 0], sizes = [1, 128], strides = [1, 1]} : vector<8x128xf32> to vector<1x128xf32>
    %135 = vector.broadcast %133 : vector<8x1xf32> to vector<8x128xf32>
    %136 = vector.broadcast %134 : vector<1x128xf32> to vector<8x128xf32>
    %137 = arith.mulf %135, %136 : vector<8x128xf32>
    %138 = arith.addf %132, %137 : vector<8x128xf32>
    %139 = vector.extract_strided_slice %67 {offsets = [0, 12], sizes = [8, 1], strides = [1, 1]} : vector<8x16xf32> to vector<8x1xf32>
    %140 = vector.extract_strided_slice %61 {offsets = [4, 0], sizes = [1, 128], strides = [1, 1]} : vector<8x128xf32> to vector<1x128xf32>
    %141 = vector.broadcast %139 : vector<8x1xf32> to vector<8x128xf32>
    %142 = vector.broadcast %140 : vector<1x128xf32> to vector<8x128xf32>
    %143 = arith.mulf %141, %142 : vector<8x128xf32>
    %144 = arith.addf %138, %143 : vector<8x128xf32>
    %145 = vector.extract_strided_slice %67 {offsets = [0, 13], sizes = [8, 1], strides = [1, 1]} : vector<8x16xf32> to vector<8x1xf32>
    %146 = vector.extract_strided_slice %61 {offsets = [5, 0], sizes = [1, 128], strides = [1, 1]} : vector<8x128xf32> to vector<1x128xf32>
    %147 = vector.broadcast %145 : vector<8x1xf32> to vector<8x128xf32>
    %148 = vector.broadcast %146 : vector<1x128xf32> to vector<8x128xf32>
    %149 = arith.mulf %147, %148 : vector<8x128xf32>
    %150 = arith.addf %144, %149 : vector<8x128xf32>
    %151 = vector.extract_strided_slice %67 {offsets = [0, 14], sizes = [8, 1], strides = [1, 1]} : vector<8x16xf32> to vector<8x1xf32>
    %152 = vector.extract_strided_slice %61 {offsets = [6, 0], sizes = [1, 128], strides = [1, 1]} : vector<8x128xf32> to vector<1x128xf32>
    %153 = vector.broadcast %151 : vector<8x1xf32> to vector<8x128xf32>
    %154 = vector.broadcast %152 : vector<1x128xf32> to vector<8x128xf32>
    %155 = arith.mulf %153, %154 : vector<8x128xf32>
    %156 = arith.addf %150, %155 : vector<8x128xf32>
    %157 = vector.extract_strided_slice %67 {offsets = [0, 15], sizes = [8, 1], strides = [1, 1]} : vector<8x16xf32> to vector<8x1xf32>
    %158 = vector.extract_strided_slice %61 {offsets = [7, 0], sizes = [1, 128], strides = [1, 1]} : vector<8x128xf32> to vector<1x128xf32>
    %159 = vector.broadcast %157 : vector<8x1xf32> to vector<8x128xf32>
    %160 = vector.broadcast %158 : vector<1x128xf32> to vector<8x128xf32>
    %161 = arith.mulf %159, %160 : vector<8x128xf32>
    %162 = arith.addf %156, %161 : vector<8x128xf32>
    %c0_13 = arith.constant 0 : index
    %c0_14 = arith.constant 0 : index
    %163 = vector.load %arg6[%c0_13, %c0_14] : memref<8x1xf32, #tpu.memory_space<vmem>>, vector<8x1xf32>
    %164 = vector.broadcast %163 : vector<8x1xf32> to vector<8x128xf32>
    %165 = arith.addf %162, %164 : vector<8x128xf32>
    %cst_15 = arith.constant 0.000000e+00 : f32
    %166 = vector.broadcast %cst_15 : f32 to vector<8x128xf32>
    %167 = arith.maximumf %165, %166 : vector<8x128xf32>
    %c0_16 = arith.constant 0 : index
    %c0_17 = arith.constant 0 : index
    %168 = vector.load %arg7[%c0_16, %c0_17] : memref<8x4xf32, #tpu.memory_space<vmem>>, vector<8x4xf32>
    %169 = vector.extract_strided_slice %168 {offsets = [0, 0], sizes = [8, 1], strides = [1, 1]} : vector<8x4xf32> to vector<8x1xf32>
    %170 = vector.extract_strided_slice %1 {offsets = [0, 0], sizes = [1, 128], strides = [1, 1]} : vector<4x128xf32> to vector<1x128xf32>
    %171 = vector.broadcast %169 : vector<8x1xf32> to vector<8x128xf32>
    %172 = vector.broadcast %170 : vector<1x128xf32> to vector<8x128xf32>
    %173 = arith.mulf %171, %172 : vector<8x128xf32>
    %174 = vector.extract_strided_slice %168 {offsets = [0, 1], sizes = [8, 1], strides = [1, 1]} : vector<8x4xf32> to vector<8x1xf32>
    %175 = vector.extract_strided_slice %1 {offsets = [1, 0], sizes = [1, 128], strides = [1, 1]} : vector<4x128xf32> to vector<1x128xf32>
    %176 = vector.broadcast %174 : vector<8x1xf32> to vector<8x128xf32>
    %177 = vector.broadcast %175 : vector<1x128xf32> to vector<8x128xf32>
    %178 = arith.mulf %176, %177 : vector<8x128xf32>
    %179 = arith.addf %173, %178 : vector<8x128xf32>
    %180 = vector.extract_strided_slice %168 {offsets = [0, 2], sizes = [8, 1], strides = [1, 1]} : vector<8x4xf32> to vector<8x1xf32>
    %181 = vector.extract_strided_slice %1 {offsets = [2, 0], sizes = [1, 128], strides = [1, 1]} : vector<4x128xf32> to vector<1x128xf32>
    %182 = vector.broadcast %180 : vector<8x1xf32> to vector<8x128xf32>
    %183 = vector.broadcast %181 : vector<1x128xf32> to vector<8x128xf32>
    %184 = arith.mulf %182, %183 : vector<8x128xf32>
    %185 = arith.addf %179, %184 : vector<8x128xf32>
    %186 = vector.extract_strided_slice %168 {offsets = [0, 3], sizes = [8, 1], strides = [1, 1]} : vector<8x4xf32> to vector<8x1xf32>
    %187 = vector.extract_strided_slice %1 {offsets = [3, 0], sizes = [1, 128], strides = [1, 1]} : vector<4x128xf32> to vector<1x128xf32>
    %188 = vector.broadcast %186 : vector<8x1xf32> to vector<8x128xf32>
    %189 = vector.broadcast %187 : vector<1x128xf32> to vector<8x128xf32>
    %190 = arith.mulf %188, %189 : vector<8x128xf32>
    %191 = arith.addf %185, %190 : vector<8x128xf32>
    %c0_18 = arith.constant 0 : index
    %c0_19 = arith.constant 0 : index
    %192 = vector.load %arg8[%c0_18, %c0_19] : memref<8x1xf32, #tpu.memory_space<vmem>>, vector<8x1xf32>
    %193 = vector.broadcast %192 : vector<8x1xf32> to vector<8x128xf32>
    %194 = arith.addf %191, %193 : vector<8x128xf32>
    %195 = arith.addf %167, %194 : vector<8x128xf32>
    %cst_20 = arith.constant 0.000000e+00 : f32
    %196 = vector.broadcast %cst_20 : f32 to vector<8x128xf32>
    %197 = arith.maximumf %195, %196 : vector<8x128xf32>
    %c2_i32 = arith.constant 2 : i32
    %198 = tpu.dynamic_rotate %197 by %c2_i32 dim 1 : vector<8x128xf32>, i32 -> vector<8x128xf32>
    %c2_i32_21 = arith.constant 2 : i32
    %199 = vector.broadcast %c2_i32_21 : i32 to vector<1x128xi32>
    %200 = arith.cmpi sge, %0, %199 : vector<1x128xi32>
    %cst_22 = arith.constant 0.000000e+00 : f32
    %201 = vector.shape_cast %200 : vector<1x128xi1> to vector<1x128xi1>
    %202 = vector.broadcast %201 : vector<1x128xi1> to vector<8x128xi1>
    %203 = vector.broadcast %cst_22 : f32 to vector<8x128xf32>
    %204 = arith.select %202, %198, %203 : vector<8x128xi1>, vector<8x128xf32>
    %c0_23 = arith.constant 0 : index
    %c0_24 = arith.constant 0 : index
    %205 = vector.load %arg9[%c0_23, %c0_24] : memref<8x16xf32, #tpu.memory_space<vmem>>, vector<8x16xf32>
    %206 = vector.extract_strided_slice %205 {offsets = [0, 0], sizes = [8, 1], strides = [1, 1]} : vector<8x16xf32> to vector<8x1xf32>
    %207 = vector.extract_strided_slice %204 {offsets = [0, 0], sizes = [1, 128], strides = [1, 1]} : vector<8x128xf32> to vector<1x128xf32>
    %208 = vector.broadcast %206 : vector<8x1xf32> to vector<8x128xf32>
    %209 = vector.broadcast %207 : vector<1x128xf32> to vector<8x128xf32>
    %210 = arith.mulf %208, %209 : vector<8x128xf32>
    %211 = vector.extract_strided_slice %205 {offsets = [0, 1], sizes = [8, 1], strides = [1, 1]} : vector<8x16xf32> to vector<8x1xf32>
    %212 = vector.extract_strided_slice %204 {offsets = [1, 0], sizes = [1, 128], strides = [1, 1]} : vector<8x128xf32> to vector<1x128xf32>
    %213 = vector.broadcast %211 : vector<8x1xf32> to vector<8x128xf32>
    %214 = vector.broadcast %212 : vector<1x128xf32> to vector<8x128xf32>
    %215 = arith.mulf %213, %214 : vector<8x128xf32>
    %216 = arith.addf %210, %215 : vector<8x128xf32>
    %217 = vector.extract_strided_slice %205 {offsets = [0, 2], sizes = [8, 1], strides = [1, 1]} : vector<8x16xf32> to vector<8x1xf32>
    %218 = vector.extract_strided_slice %204 {offsets = [2, 0], sizes = [1, 128], strides = [1, 1]} : vector<8x128xf32> to vector<1x128xf32>
    %219 = vector.broadcast %217 : vector<8x1xf32> to vector<8x128xf32>
    %220 = vector.broadcast %218 : vector<1x128xf32> to vector<8x128xf32>
    %221 = arith.mulf %219, %220 : vector<8x128xf32>
    %222 = arith.addf %216, %221 : vector<8x128xf32>
    %223 = vector.extract_strided_slice %205 {offsets = [0, 3], sizes = [8, 1], strides = [1, 1]} : vector<8x16xf32> to vector<8x1xf32>
    %224 = vector.extract_strided_slice %204 {offsets = [3, 0], sizes = [1, 128], strides = [1, 1]} : vector<8x128xf32> to vector<1x128xf32>
    %225 = vector.broadcast %223 : vector<8x1xf32> to vector<8x128xf32>
    %226 = vector.broadcast %224 : vector<1x128xf32> to vector<8x128xf32>
    %227 = arith.mulf %225, %226 : vector<8x128xf32>
    %228 = arith.addf %222, %227 : vector<8x128xf32>
    %229 = vector.extract_strided_slice %205 {offsets = [0, 4], sizes = [8, 1], strides = [1, 1]} : vector<8x16xf32> to vector<8x1xf32>
    %230 = vector.extract_strided_slice %204 {offsets = [4, 0], sizes = [1, 128], strides = [1, 1]} : vector<8x128xf32> to vector<1x128xf32>
    %231 = vector.broadcast %229 : vector<8x1xf32> to vector<8x128xf32>
    %232 = vector.broadcast %230 : vector<1x128xf32> to vector<8x128xf32>
    %233 = arith.mulf %231, %232 : vector<8x128xf32>
    %234 = arith.addf %228, %233 : vector<8x128xf32>
    %235 = vector.extract_strided_slice %205 {offsets = [0, 5], sizes = [8, 1], strides = [1, 1]} : vector<8x16xf32> to vector<8x1xf32>
    %236 = vector.extract_strided_slice %204 {offsets = [5, 0], sizes = [1, 128], strides = [1, 1]} : vector<8x128xf32> to vector<1x128xf32>
    %237 = vector.broadcast %235 : vector<8x1xf32> to vector<8x128xf32>
    %238 = vector.broadcast %236 : vector<1x128xf32> to vector<8x128xf32>
    %239 = arith.mulf %237, %238 : vector<8x128xf32>
    %240 = arith.addf %234, %239 : vector<8x128xf32>
    %241 = vector.extract_strided_slice %205 {offsets = [0, 6], sizes = [8, 1], strides = [1, 1]} : vector<8x16xf32> to vector<8x1xf32>
    %242 = vector.extract_strided_slice %204 {offsets = [6, 0], sizes = [1, 128], strides = [1, 1]} : vector<8x128xf32> to vector<1x128xf32>
    %243 = vector.broadcast %241 : vector<8x1xf32> to vector<8x128xf32>
    %244 = vector.broadcast %242 : vector<1x128xf32> to vector<8x128xf32>
    %245 = arith.mulf %243, %244 : vector<8x128xf32>
    %246 = arith.addf %240, %245 : vector<8x128xf32>
    %247 = vector.extract_strided_slice %205 {offsets = [0, 7], sizes = [8, 1], strides = [1, 1]} : vector<8x16xf32> to vector<8x1xf32>
    %248 = vector.extract_strided_slice %204 {offsets = [7, 0], sizes = [1, 128], strides = [1, 1]} : vector<8x128xf32> to vector<1x128xf32>
    %249 = vector.broadcast %247 : vector<8x1xf32> to vector<8x128xf32>
    %250 = vector.broadcast %248 : vector<1x128xf32> to vector<8x128xf32>
    %251 = arith.mulf %249, %250 : vector<8x128xf32>
    %252 = arith.addf %246, %251 : vector<8x128xf32>
    %253 = vector.extract_strided_slice %205 {offsets = [0, 8], sizes = [8, 1], strides = [1, 1]} : vector<8x16xf32> to vector<8x1xf32>
    %254 = vector.extract_strided_slice %197 {offsets = [0, 0], sizes = [1, 128], strides = [1, 1]} : vector<8x128xf32> to vector<1x128xf32>
    %255 = vector.broadcast %253 : vector<8x1xf32> to vector<8x128xf32>
    %256 = vector.broadcast %254 : vector<1x128xf32> to vector<8x128xf32>
    %257 = arith.mulf %255, %256 : vector<8x128xf32>
    %258 = arith.addf %252, %257 : vector<8x128xf32>
    %259 = vector.extract_strided_slice %205 {offsets = [0, 9], sizes = [8, 1], strides = [1, 1]} : vector<8x16xf32> to vector<8x1xf32>
    %260 = vector.extract_strided_slice %197 {offsets = [1, 0], sizes = [1, 128], strides = [1, 1]} : vector<8x128xf32> to vector<1x128xf32>
    %261 = vector.broadcast %259 : vector<8x1xf32> to vector<8x128xf32>
    %262 = vector.broadcast %260 : vector<1x128xf32> to vector<8x128xf32>
    %263 = arith.mulf %261, %262 : vector<8x128xf32>
    %264 = arith.addf %258, %263 : vector<8x128xf32>
    %265 = vector.extract_strided_slice %205 {offsets = [0, 10], sizes = [8, 1], strides = [1, 1]} : vector<8x16xf32> to vector<8x1xf32>
    %266 = vector.extract_strided_slice %197 {offsets = [2, 0], sizes = [1, 128], strides = [1, 1]} : vector<8x128xf32> to vector<1x128xf32>
    %267 = vector.broadcast %265 : vector<8x1xf32> to vector<8x128xf32>
    %268 = vector.broadcast %266 : vector<1x128xf32> to vector<8x128xf32>
    %269 = arith.mulf %267, %268 : vector<8x128xf32>
    %270 = arith.addf %264, %269 : vector<8x128xf32>
    %271 = vector.extract_strided_slice %205 {offsets = [0, 11], sizes = [8, 1], strides = [1, 1]} : vector<8x16xf32> to vector<8x1xf32>
    %272 = vector.extract_strided_slice %197 {offsets = [3, 0], sizes = [1, 128], strides = [1, 1]} : vector<8x128xf32> to vector<1x128xf32>
    %273 = vector.broadcast %271 : vector<8x1xf32> to vector<8x128xf32>
    %274 = vector.broadcast %272 : vector<1x128xf32> to vector<8x128xf32>
    %275 = arith.mulf %273, %274 : vector<8x128xf32>
    %276 = arith.addf %270, %275 : vector<8x128xf32>
    %277 = vector.extract_strided_slice %205 {offsets = [0, 12], sizes = [8, 1], strides = [1, 1]} : vector<8x16xf32> to vector<8x1xf32>
    %278 = vector.extract_strided_slice %197 {offsets = [4, 0], sizes = [1, 128], strides = [1, 1]} : vector<8x128xf32> to vector<1x128xf32>
    %279 = vector.broadcast %277 : vector<8x1xf32> to vector<8x128xf32>
    %280 = vector.broadcast %278 : vector<1x128xf32> to vector<8x128xf32>
    %281 = arith.mulf %279, %280 : vector<8x128xf32>
    %282 = arith.addf %276, %281 : vector<8x128xf32>
    %283 = vector.extract_strided_slice %205 {offsets = [0, 13], sizes = [8, 1], strides = [1, 1]} : vector<8x16xf32> to vector<8x1xf32>
    %284 = vector.extract_strided_slice %197 {offsets = [5, 0], sizes = [1, 128], strides = [1, 1]} : vector<8x128xf32> to vector<1x128xf32>
    %285 = vector.broadcast %283 : vector<8x1xf32> to vector<8x128xf32>
    %286 = vector.broadcast %284 : vector<1x128xf32> to vector<8x128xf32>
    %287 = arith.mulf %285, %286 : vector<8x128xf32>
    %288 = arith.addf %282, %287 : vector<8x128xf32>
    %289 = vector.extract_strided_slice %205 {offsets = [0, 14], sizes = [8, 1], strides = [1, 1]} : vector<8x16xf32> to vector<8x1xf32>
    %290 = vector.extract_strided_slice %197 {offsets = [6, 0], sizes = [1, 128], strides = [1, 1]} : vector<8x128xf32> to vector<1x128xf32>
    %291 = vector.broadcast %289 : vector<8x1xf32> to vector<8x128xf32>
    %292 = vector.broadcast %290 : vector<1x128xf32> to vector<8x128xf32>
    %293 = arith.mulf %291, %292 : vector<8x128xf32>
    %294 = arith.addf %288, %293 : vector<8x128xf32>
    %295 = vector.extract_strided_slice %205 {offsets = [0, 15], sizes = [8, 1], strides = [1, 1]} : vector<8x16xf32> to vector<8x1xf32>
    %296 = vector.extract_strided_slice %197 {offsets = [7, 0], sizes = [1, 128], strides = [1, 1]} : vector<8x128xf32> to vector<1x128xf32>
    %297 = vector.broadcast %295 : vector<8x1xf32> to vector<8x128xf32>
    %298 = vector.broadcast %296 : vector<1x128xf32> to vector<8x128xf32>
    %299 = arith.mulf %297, %298 : vector<8x128xf32>
    %300 = arith.addf %294, %299 : vector<8x128xf32>
    %c0_25 = arith.constant 0 : index
    %c0_26 = arith.constant 0 : index
    %301 = vector.load %arg10[%c0_25, %c0_26] : memref<8x1xf32, #tpu.memory_space<vmem>>, vector<8x1xf32>
    %302 = vector.broadcast %301 : vector<8x1xf32> to vector<8x128xf32>
    %303 = arith.addf %300, %302 : vector<8x128xf32>
    %cst_27 = arith.constant 0.000000e+00 : f32
    %304 = vector.broadcast %cst_27 : f32 to vector<8x128xf32>
    %305 = arith.maximumf %303, %304 : vector<8x128xf32>
    %c2_i32_28 = arith.constant 2 : i32
    %306 = tpu.dynamic_rotate %305 by %c2_i32_28 dim 1 : vector<8x128xf32>, i32 -> vector<8x128xf32>
    %cst_29 = arith.constant 0.000000e+00 : f32
    %307 = vector.shape_cast %200 : vector<1x128xi1> to vector<1x128xi1>
    %308 = vector.broadcast %307 : vector<1x128xi1> to vector<8x128xi1>
    %309 = vector.broadcast %cst_29 : f32 to vector<8x128xf32>
    %310 = arith.select %308, %306, %309 : vector<8x128xi1>, vector<8x128xf32>
    %c0_30 = arith.constant 0 : index
    %c0_31 = arith.constant 0 : index
    %311 = vector.load %arg11[%c0_30, %c0_31] : memref<8x16xf32, #tpu.memory_space<vmem>>, vector<8x16xf32>
    %312 = vector.extract_strided_slice %311 {offsets = [0, 0], sizes = [8, 1], strides = [1, 1]} : vector<8x16xf32> to vector<8x1xf32>
    %313 = vector.extract_strided_slice %310 {offsets = [0, 0], sizes = [1, 128], strides = [1, 1]} : vector<8x128xf32> to vector<1x128xf32>
    %314 = vector.broadcast %312 : vector<8x1xf32> to vector<8x128xf32>
    %315 = vector.broadcast %313 : vector<1x128xf32> to vector<8x128xf32>
    %316 = arith.mulf %314, %315 : vector<8x128xf32>
    %317 = vector.extract_strided_slice %311 {offsets = [0, 1], sizes = [8, 1], strides = [1, 1]} : vector<8x16xf32> to vector<8x1xf32>
    %318 = vector.extract_strided_slice %310 {offsets = [1, 0], sizes = [1, 128], strides = [1, 1]} : vector<8x128xf32> to vector<1x128xf32>
    %319 = vector.broadcast %317 : vector<8x1xf32> to vector<8x128xf32>
    %320 = vector.broadcast %318 : vector<1x128xf32> to vector<8x128xf32>
    %321 = arith.mulf %319, %320 : vector<8x128xf32>
    %322 = arith.addf %316, %321 : vector<8x128xf32>
    %323 = vector.extract_strided_slice %311 {offsets = [0, 2], sizes = [8, 1], strides = [1, 1]} : vector<8x16xf32> to vector<8x1xf32>
    %324 = vector.extract_strided_slice %310 {offsets = [2, 0], sizes = [1, 128], strides = [1, 1]} : vector<8x128xf32> to vector<1x128xf32>
    %325 = vector.broadcast %323 : vector<8x1xf32> to vector<8x128xf32>
    %326 = vector.broadcast %324 : vector<1x128xf32> to vector<8x128xf32>
    %327 = arith.mulf %325, %326 : vector<8x128xf32>
    %328 = arith.addf %322, %327 : vector<8x128xf32>
    %329 = vector.extract_strided_slice %311 {offsets = [0, 3], sizes = [8, 1], strides = [1, 1]} : vector<8x16xf32> to vector<8x1xf32>
    %330 = vector.extract_strided_slice %310 {offsets = [3, 0], sizes = [1, 128], strides = [1, 1]} : vector<8x128xf32> to vector<1x128xf32>
    %331 = vector.broadcast %329 : vector<8x1xf32> to vector<8x128xf32>
    %332 = vector.broadcast %330 : vector<1x128xf32> to vector<8x128xf32>
    %333 = arith.mulf %331, %332 : vector<8x128xf32>
    %334 = arith.addf %328, %333 : vector<8x128xf32>
    %335 = vector.extract_strided_slice %311 {offsets = [0, 4], sizes = [8, 1], strides = [1, 1]} : vector<8x16xf32> to vector<8x1xf32>
    %336 = vector.extract_strided_slice %310 {offsets = [4, 0], sizes = [1, 128], strides = [1, 1]} : vector<8x128xf32> to vector<1x128xf32>
    %337 = vector.broadcast %335 : vector<8x1xf32> to vector<8x128xf32>
    %338 = vector.broadcast %336 : vector<1x128xf32> to vector<8x128xf32>
    %339 = arith.mulf %337, %338 : vector<8x128xf32>
    %340 = arith.addf %334, %339 : vector<8x128xf32>
    %341 = vector.extract_strided_slice %311 {offsets = [0, 5], sizes = [8, 1], strides = [1, 1]} : vector<8x16xf32> to vector<8x1xf32>
    %342 = vector.extract_strided_slice %310 {offsets = [5, 0], sizes = [1, 128], strides = [1, 1]} : vector<8x128xf32> to vector<1x128xf32>
    %343 = vector.broadcast %341 : vector<8x1xf32> to vector<8x128xf32>
    %344 = vector.broadcast %342 : vector<1x128xf32> to vector<8x128xf32>
    %345 = arith.mulf %343, %344 : vector<8x128xf32>
    %346 = arith.addf %340, %345 : vector<8x128xf32>
    %347 = vector.extract_strided_slice %311 {offsets = [0, 6], sizes = [8, 1], strides = [1, 1]} : vector<8x16xf32> to vector<8x1xf32>
    %348 = vector.extract_strided_slice %310 {offsets = [6, 0], sizes = [1, 128], strides = [1, 1]} : vector<8x128xf32> to vector<1x128xf32>
    %349 = vector.broadcast %347 : vector<8x1xf32> to vector<8x128xf32>
    %350 = vector.broadcast %348 : vector<1x128xf32> to vector<8x128xf32>
    %351 = arith.mulf %349, %350 : vector<8x128xf32>
    %352 = arith.addf %346, %351 : vector<8x128xf32>
    %353 = vector.extract_strided_slice %311 {offsets = [0, 7], sizes = [8, 1], strides = [1, 1]} : vector<8x16xf32> to vector<8x1xf32>
    %354 = vector.extract_strided_slice %310 {offsets = [7, 0], sizes = [1, 128], strides = [1, 1]} : vector<8x128xf32> to vector<1x128xf32>
    %355 = vector.broadcast %353 : vector<8x1xf32> to vector<8x128xf32>
    %356 = vector.broadcast %354 : vector<1x128xf32> to vector<8x128xf32>
    %357 = arith.mulf %355, %356 : vector<8x128xf32>
    %358 = arith.addf %352, %357 : vector<8x128xf32>
    %359 = vector.extract_strided_slice %311 {offsets = [0, 8], sizes = [8, 1], strides = [1, 1]} : vector<8x16xf32> to vector<8x1xf32>
    %360 = vector.extract_strided_slice %305 {offsets = [0, 0], sizes = [1, 128], strides = [1, 1]} : vector<8x128xf32> to vector<1x128xf32>
    %361 = vector.broadcast %359 : vector<8x1xf32> to vector<8x128xf32>
    %362 = vector.broadcast %360 : vector<1x128xf32> to vector<8x128xf32>
    %363 = arith.mulf %361, %362 : vector<8x128xf32>
    %364 = arith.addf %358, %363 : vector<8x128xf32>
    %365 = vector.extract_strided_slice %311 {offsets = [0, 9], sizes = [8, 1], strides = [1, 1]} : vector<8x16xf32> to vector<8x1xf32>
    %366 = vector.extract_strided_slice %305 {offsets = [1, 0], sizes = [1, 128], strides = [1, 1]} : vector<8x128xf32> to vector<1x128xf32>
    %367 = vector.broadcast %365 : vector<8x1xf32> to vector<8x128xf32>
    %368 = vector.broadcast %366 : vector<1x128xf32> to vector<8x128xf32>
    %369 = arith.mulf %367, %368 : vector<8x128xf32>
    %370 = arith.addf %364, %369 : vector<8x128xf32>
    %371 = vector.extract_strided_slice %311 {offsets = [0, 10], sizes = [8, 1], strides = [1, 1]} : vector<8x16xf32> to vector<8x1xf32>
    %372 = vector.extract_strided_slice %305 {offsets = [2, 0], sizes = [1, 128], strides = [1, 1]} : vector<8x128xf32> to vector<1x128xf32>
    %373 = vector.broadcast %371 : vector<8x1xf32> to vector<8x128xf32>
    %374 = vector.broadcast %372 : vector<1x128xf32> to vector<8x128xf32>
    %375 = arith.mulf %373, %374 : vector<8x128xf32>
    %376 = arith.addf %370, %375 : vector<8x128xf32>
    %377 = vector.extract_strided_slice %311 {offsets = [0, 11], sizes = [8, 1], strides = [1, 1]} : vector<8x16xf32> to vector<8x1xf32>
    %378 = vector.extract_strided_slice %305 {offsets = [3, 0], sizes = [1, 128], strides = [1, 1]} : vector<8x128xf32> to vector<1x128xf32>
    %379 = vector.broadcast %377 : vector<8x1xf32> to vector<8x128xf32>
    %380 = vector.broadcast %378 : vector<1x128xf32> to vector<8x128xf32>
    %381 = arith.mulf %379, %380 : vector<8x128xf32>
    %382 = arith.addf %376, %381 : vector<8x128xf32>
    %383 = vector.extract_strided_slice %311 {offsets = [0, 12], sizes = [8, 1], strides = [1, 1]} : vector<8x16xf32> to vector<8x1xf32>
    %384 = vector.extract_strided_slice %305 {offsets = [4, 0], sizes = [1, 128], strides = [1, 1]} : vector<8x128xf32> to vector<1x128xf32>
    %385 = vector.broadcast %383 : vector<8x1xf32> to vector<8x128xf32>
    %386 = vector.broadcast %384 : vector<1x128xf32> to vector<8x128xf32>
    %387 = arith.mulf %385, %386 : vector<8x128xf32>
    %388 = arith.addf %382, %387 : vector<8x128xf32>
    %389 = vector.extract_strided_slice %311 {offsets = [0, 13], sizes = [8, 1], strides = [1, 1]} : vector<8x16xf32> to vector<8x1xf32>
    %390 = vector.extract_strided_slice %305 {offsets = [5, 0], sizes = [1, 128], strides = [1, 1]} : vector<8x128xf32> to vector<1x128xf32>
    %391 = vector.broadcast %389 : vector<8x1xf32> to vector<8x128xf32>
    %392 = vector.broadcast %390 : vector<1x128xf32> to vector<8x128xf32>
    %393 = arith.mulf %391, %392 : vector<8x128xf32>
    %394 = arith.addf %388, %393 : vector<8x128xf32>
    %395 = vector.extract_strided_slice %311 {offsets = [0, 14], sizes = [8, 1], strides = [1, 1]} : vector<8x16xf32> to vector<8x1xf32>
    %396 = vector.extract_strided_slice %305 {offsets = [6, 0], sizes = [1, 128], strides = [1, 1]} : vector<8x128xf32> to vector<1x128xf32>
    %397 = vector.broadcast %395 : vector<8x1xf32> to vector<8x128xf32>
    %398 = vector.broadcast %396 : vector<1x128xf32> to vector<8x128xf32>
    %399 = arith.mulf %397, %398 : vector<8x128xf32>
    %400 = arith.addf %394, %399 : vector<8x128xf32>
    %401 = vector.extract_strided_slice %311 {offsets = [0, 15], sizes = [8, 1], strides = [1, 1]} : vector<8x16xf32> to vector<8x1xf32>
    %402 = vector.extract_strided_slice %305 {offsets = [7, 0], sizes = [1, 128], strides = [1, 1]} : vector<8x128xf32> to vector<1x128xf32>
    %403 = vector.broadcast %401 : vector<8x1xf32> to vector<8x128xf32>
    %404 = vector.broadcast %402 : vector<1x128xf32> to vector<8x128xf32>
    %405 = arith.mulf %403, %404 : vector<8x128xf32>
    %406 = arith.addf %400, %405 : vector<8x128xf32>
    %c0_32 = arith.constant 0 : index
    %c0_33 = arith.constant 0 : index
    %407 = vector.load %arg12[%c0_32, %c0_33] : memref<8x1xf32, #tpu.memory_space<vmem>>, vector<8x1xf32>
    %408 = vector.broadcast %407 : vector<8x1xf32> to vector<8x128xf32>
    %409 = arith.addf %406, %408 : vector<8x128xf32>
    %cst_34 = arith.constant 0.000000e+00 : f32
    %410 = vector.broadcast %cst_34 : f32 to vector<8x128xf32>
    %411 = arith.maximumf %409, %410 : vector<8x128xf32>
    %412 = arith.addf %411, %197 : vector<8x128xf32>
    %cst_35 = arith.constant 0.000000e+00 : f32
    %413 = vector.broadcast %cst_35 : f32 to vector<8x128xf32>
    %414 = arith.maximumf %412, %413 : vector<8x128xf32>
    %c4_i32 = arith.constant 4 : i32
    %415 = tpu.dynamic_rotate %414 by %c4_i32 dim 1 : vector<8x128xf32>, i32 -> vector<8x128xf32>
    %c4_i32_36 = arith.constant 4 : i32
    %416 = vector.broadcast %c4_i32_36 : i32 to vector<1x128xi32>
    %417 = arith.cmpi sge, %0, %416 : vector<1x128xi32>
    %cst_37 = arith.constant 0.000000e+00 : f32
    %418 = vector.shape_cast %417 : vector<1x128xi1> to vector<1x128xi1>
    %419 = vector.broadcast %418 : vector<1x128xi1> to vector<8x128xi1>
    %420 = vector.broadcast %cst_37 : f32 to vector<8x128xf32>
    %421 = arith.select %419, %415, %420 : vector<8x128xi1>, vector<8x128xf32>
    %c0_38 = arith.constant 0 : index
    %c0_39 = arith.constant 0 : index
    %422 = vector.load %arg13[%c0_38, %c0_39] : memref<1x16xf32, #tpu.memory_space<vmem>>, vector<1x16xf32>
    %423 = vector.extract_strided_slice %422 {offsets = [0, 0], sizes = [1, 1], strides = [1, 1]} : vector<1x16xf32> to vector<1x1xf32>
    %424 = vector.extract_strided_slice %421 {offsets = [0, 0], sizes = [1, 128], strides = [1, 1]} : vector<8x128xf32> to vector<1x128xf32>
    %425 = vector.broadcast %423 : vector<1x1xf32> to vector<1x128xf32>
    %426 = arith.mulf %425, %424 : vector<1x128xf32>
    %427 = vector.extract_strided_slice %422 {offsets = [0, 1], sizes = [1, 1], strides = [1, 1]} : vector<1x16xf32> to vector<1x1xf32>
    %428 = vector.extract_strided_slice %421 {offsets = [1, 0], sizes = [1, 128], strides = [1, 1]} : vector<8x128xf32> to vector<1x128xf32>
    %429 = vector.broadcast %427 : vector<1x1xf32> to vector<1x128xf32>
    %430 = arith.mulf %429, %428 : vector<1x128xf32>
    %431 = arith.addf %426, %430 : vector<1x128xf32>
    %432 = vector.extract_strided_slice %422 {offsets = [0, 2], sizes = [1, 1], strides = [1, 1]} : vector<1x16xf32> to vector<1x1xf32>
    %433 = vector.extract_strided_slice %421 {offsets = [2, 0], sizes = [1, 128], strides = [1, 1]} : vector<8x128xf32> to vector<1x128xf32>
    %434 = vector.broadcast %432 : vector<1x1xf32> to vector<1x128xf32>
    %435 = arith.mulf %434, %433 : vector<1x128xf32>
    %436 = arith.addf %431, %435 : vector<1x128xf32>
    %437 = vector.extract_strided_slice %422 {offsets = [0, 3], sizes = [1, 1], strides = [1, 1]} : vector<1x16xf32> to vector<1x1xf32>
    %438 = vector.extract_strided_slice %421 {offsets = [3, 0], sizes = [1, 128], strides = [1, 1]} : vector<8x128xf32> to vector<1x128xf32>
    %439 = vector.broadcast %437 : vector<1x1xf32> to vector<1x128xf32>
    %440 = arith.mulf %439, %438 : vector<1x128xf32>
    %441 = arith.addf %436, %440 : vector<1x128xf32>
    %442 = vector.extract_strided_slice %422 {offsets = [0, 4], sizes = [1, 1], strides = [1, 1]} : vector<1x16xf32> to vector<1x1xf32>
    %443 = vector.extract_strided_slice %421 {offsets = [4, 0], sizes = [1, 128], strides = [1, 1]} : vector<8x128xf32> to vector<1x128xf32>
    %444 = vector.broadcast %442 : vector<1x1xf32> to vector<1x128xf32>
    %445 = arith.mulf %444, %443 : vector<1x128xf32>
    %446 = arith.addf %441, %445 : vector<1x128xf32>
    %447 = vector.extract_strided_slice %422 {offsets = [0, 5], sizes = [1, 1], strides = [1, 1]} : vector<1x16xf32> to vector<1x1xf32>
    %448 = vector.extract_strided_slice %421 {offsets = [5, 0], sizes = [1, 128], strides = [1, 1]} : vector<8x128xf32> to vector<1x128xf32>
    %449 = vector.broadcast %447 : vector<1x1xf32> to vector<1x128xf32>
    %450 = arith.mulf %449, %448 : vector<1x128xf32>
    %451 = arith.addf %446, %450 : vector<1x128xf32>
    %452 = vector.extract_strided_slice %422 {offsets = [0, 6], sizes = [1, 1], strides = [1, 1]} : vector<1x16xf32> to vector<1x1xf32>
    %453 = vector.extract_strided_slice %421 {offsets = [6, 0], sizes = [1, 128], strides = [1, 1]} : vector<8x128xf32> to vector<1x128xf32>
    %454 = vector.broadcast %452 : vector<1x1xf32> to vector<1x128xf32>
    %455 = arith.mulf %454, %453 : vector<1x128xf32>
    %456 = arith.addf %451, %455 : vector<1x128xf32>
    %457 = vector.extract_strided_slice %422 {offsets = [0, 7], sizes = [1, 1], strides = [1, 1]} : vector<1x16xf32> to vector<1x1xf32>
    %458 = vector.extract_strided_slice %421 {offsets = [7, 0], sizes = [1, 128], strides = [1, 1]} : vector<8x128xf32> to vector<1x128xf32>
    %459 = vector.broadcast %457 : vector<1x1xf32> to vector<1x128xf32>
    %460 = arith.mulf %459, %458 : vector<1x128xf32>
    %461 = arith.addf %456, %460 : vector<1x128xf32>
    %462 = vector.extract_strided_slice %422 {offsets = [0, 8], sizes = [1, 1], strides = [1, 1]} : vector<1x16xf32> to vector<1x1xf32>
    %463 = vector.extract_strided_slice %414 {offsets = [0, 0], sizes = [1, 128], strides = [1, 1]} : vector<8x128xf32> to vector<1x128xf32>
    %464 = vector.broadcast %462 : vector<1x1xf32> to vector<1x128xf32>
    %465 = arith.mulf %464, %463 : vector<1x128xf32>
    %466 = arith.addf %461, %465 : vector<1x128xf32>
    %467 = vector.extract_strided_slice %422 {offsets = [0, 9], sizes = [1, 1], strides = [1, 1]} : vector<1x16xf32> to vector<1x1xf32>
    %468 = vector.extract_strided_slice %414 {offsets = [1, 0], sizes = [1, 128], strides = [1, 1]} : vector<8x128xf32> to vector<1x128xf32>
    %469 = vector.broadcast %467 : vector<1x1xf32> to vector<1x128xf32>
    %470 = arith.mulf %469, %468 : vector<1x128xf32>
    %471 = arith.addf %466, %470 : vector<1x128xf32>
    %472 = vector.extract_strided_slice %422 {offsets = [0, 10], sizes = [1, 1], strides = [1, 1]} : vector<1x16xf32> to vector<1x1xf32>
    %473 = vector.extract_strided_slice %414 {offsets = [2, 0], sizes = [1, 128], strides = [1, 1]} : vector<8x128xf32> to vector<1x128xf32>
    %474 = vector.broadcast %472 : vector<1x1xf32> to vector<1x128xf32>
    %475 = arith.mulf %474, %473 : vector<1x128xf32>
    %476 = arith.addf %471, %475 : vector<1x128xf32>
    %477 = vector.extract_strided_slice %422 {offsets = [0, 11], sizes = [1, 1], strides = [1, 1]} : vector<1x16xf32> to vector<1x1xf32>
    %478 = vector.extract_strided_slice %414 {offsets = [3, 0], sizes = [1, 128], strides = [1, 1]} : vector<8x128xf32> to vector<1x128xf32>
    %479 = vector.broadcast %477 : vector<1x1xf32> to vector<1x128xf32>
    %480 = arith.mulf %479, %478 : vector<1x128xf32>
    %481 = arith.addf %476, %480 : vector<1x128xf32>
    %482 = vector.extract_strided_slice %422 {offsets = [0, 12], sizes = [1, 1], strides = [1, 1]} : vector<1x16xf32> to vector<1x1xf32>
    %483 = vector.extract_strided_slice %414 {offsets = [4, 0], sizes = [1, 128], strides = [1, 1]} : vector<8x128xf32> to vector<1x128xf32>
    %484 = vector.broadcast %482 : vector<1x1xf32> to vector<1x128xf32>
    %485 = arith.mulf %484, %483 : vector<1x128xf32>
    %486 = arith.addf %481, %485 : vector<1x128xf32>
    %487 = vector.extract_strided_slice %422 {offsets = [0, 13], sizes = [1, 1], strides = [1, 1]} : vector<1x16xf32> to vector<1x1xf32>
    %488 = vector.extract_strided_slice %414 {offsets = [5, 0], sizes = [1, 128], strides = [1, 1]} : vector<8x128xf32> to vector<1x128xf32>
    %489 = vector.broadcast %487 : vector<1x1xf32> to vector<1x128xf32>
    %490 = arith.mulf %489, %488 : vector<1x128xf32>
    %491 = arith.addf %486, %490 : vector<1x128xf32>
    %492 = vector.extract_strided_slice %422 {offsets = [0, 14], sizes = [1, 1], strides = [1, 1]} : vector<1x16xf32> to vector<1x1xf32>
    %493 = vector.extract_strided_slice %414 {offsets = [6, 0], sizes = [1, 128], strides = [1, 1]} : vector<8x128xf32> to vector<1x128xf32>
    %494 = vector.broadcast %492 : vector<1x1xf32> to vector<1x128xf32>
    %495 = arith.mulf %494, %493 : vector<1x128xf32>
    %496 = arith.addf %491, %495 : vector<1x128xf32>
    %497 = vector.extract_strided_slice %422 {offsets = [0, 15], sizes = [1, 1], strides = [1, 1]} : vector<1x16xf32> to vector<1x1xf32>
    %498 = vector.extract_strided_slice %414 {offsets = [7, 0], sizes = [1, 128], strides = [1, 1]} : vector<8x128xf32> to vector<1x128xf32>
    %499 = vector.broadcast %497 : vector<1x1xf32> to vector<1x128xf32>
    %500 = arith.mulf %499, %498 : vector<1x128xf32>
    %501 = arith.addf %496, %500 : vector<1x128xf32>
    %c0_40 = arith.constant 0 : index
    %c0_41 = arith.constant 0 : index
    %502 = vector.load %arg14[%c0_40, %c0_41] : memref<1x1xf32, #tpu.memory_space<vmem>>, vector<1x1xf32>
    %503 = vector.broadcast %502 : vector<1x1xf32> to vector<1x128xf32>
    %504 = arith.addf %501, %503 : vector<1x128xf32>
    %cst_42 = arith.constant 0.000000e+00 : f32
    %505 = vector.broadcast %cst_42 : f32 to vector<1x128xf32>
    %506 = arith.maximumf %504, %505 : vector<1x128xf32>
    %c4_i32_43 = arith.constant 4 : i32
    %507 = tpu.dynamic_rotate %506 by %c4_i32_43 dim 1 : vector<1x128xf32>, i32 -> vector<1x128xf32>
    %cst_44 = arith.constant 0.000000e+00 : f32
    %508 = vector.broadcast %cst_44 : f32 to vector<1x128xf32>
    %509 = arith.select %417, %507, %508 : vector<1x128xi1>, vector<1x128xf32>
    %c0_45 = arith.constant 0 : index
    %c0_46 = arith.constant 0 : index
    %510 = vector.load %arg15[%c0_45, %c0_46] : memref<1x2xf32, #tpu.memory_space<vmem>>, vector<1x2xf32>
    %511 = vector.extract_strided_slice %510 {offsets = [0, 0], sizes = [1, 1], strides = [1, 1]} : vector<1x2xf32> to vector<1x1xf32>
    %512 = vector.broadcast %511 : vector<1x1xf32> to vector<1x128xf32>
    %513 = arith.mulf %512, %509 : vector<1x128xf32>
    %514 = vector.extract_strided_slice %510 {offsets = [0, 1], sizes = [1, 1], strides = [1, 1]} : vector<1x2xf32> to vector<1x1xf32>
    %515 = vector.broadcast %514 : vector<1x1xf32> to vector<1x128xf32>
    %516 = arith.mulf %515, %506 : vector<1x128xf32>
    %517 = arith.addf %513, %516 : vector<1x128xf32>
    %c0_47 = arith.constant 0 : index
    %c0_48 = arith.constant 0 : index
    %518 = vector.load %arg16[%c0_47, %c0_48] : memref<1x1xf32, #tpu.memory_space<vmem>>, vector<1x1xf32>
    %519 = vector.broadcast %518 : vector<1x1xf32> to vector<1x128xf32>
    %520 = arith.addf %517, %519 : vector<1x128xf32>
    %cst_49 = arith.constant 0.000000e+00 : f32
    %521 = vector.broadcast %cst_49 : f32 to vector<1x128xf32>
    %522 = arith.maximumf %520, %521 : vector<1x128xf32>
    %c0_50 = arith.constant 0 : index
    %c0_51 = arith.constant 0 : index
    %523 = vector.load %arg17[%c0_50, %c0_51] : memref<1x8xf32, #tpu.memory_space<vmem>>, vector<1x8xf32>
    %524 = vector.extract_strided_slice %523 {offsets = [0, 0], sizes = [1, 1], strides = [1, 1]} : vector<1x8xf32> to vector<1x1xf32>
    %525 = vector.extract_strided_slice %414 {offsets = [0, 0], sizes = [1, 128], strides = [1, 1]} : vector<8x128xf32> to vector<1x128xf32>
    %526 = vector.broadcast %524 : vector<1x1xf32> to vector<1x128xf32>
    %527 = arith.mulf %526, %525 : vector<1x128xf32>
    %528 = vector.extract_strided_slice %523 {offsets = [0, 1], sizes = [1, 1], strides = [1, 1]} : vector<1x8xf32> to vector<1x1xf32>
    %529 = vector.extract_strided_slice %414 {offsets = [1, 0], sizes = [1, 128], strides = [1, 1]} : vector<8x128xf32> to vector<1x128xf32>
    %530 = vector.broadcast %528 : vector<1x1xf32> to vector<1x128xf32>
    %531 = arith.mulf %530, %529 : vector<1x128xf32>
    %532 = arith.addf %527, %531 : vector<1x128xf32>
    %533 = vector.extract_strided_slice %523 {offsets = [0, 2], sizes = [1, 1], strides = [1, 1]} : vector<1x8xf32> to vector<1x1xf32>
    %534 = vector.extract_strided_slice %414 {offsets = [2, 0], sizes = [1, 128], strides = [1, 1]} : vector<8x128xf32> to vector<1x128xf32>
    %535 = vector.broadcast %533 : vector<1x1xf32> to vector<1x128xf32>
    %536 = arith.mulf %535, %534 : vector<1x128xf32>
    %537 = arith.addf %532, %536 : vector<1x128xf32>
    %538 = vector.extract_strided_slice %523 {offsets = [0, 3], sizes = [1, 1], strides = [1, 1]} : vector<1x8xf32> to vector<1x1xf32>
    %539 = vector.extract_strided_slice %414 {offsets = [3, 0], sizes = [1, 128], strides = [1, 1]} : vector<8x128xf32> to vector<1x128xf32>
    %540 = vector.broadcast %538 : vector<1x1xf32> to vector<1x128xf32>
    %541 = arith.mulf %540, %539 : vector<1x128xf32>
    %542 = arith.addf %537, %541 : vector<1x128xf32>
    %543 = vector.extract_strided_slice %523 {offsets = [0, 4], sizes = [1, 1], strides = [1, 1]} : vector<1x8xf32> to vector<1x1xf32>
    %544 = vector.extract_strided_slice %414 {offsets = [4, 0], sizes = [1, 128], strides = [1, 1]} : vector<8x128xf32> to vector<1x128xf32>
    %545 = vector.broadcast %543 : vector<1x1xf32> to vector<1x128xf32>
    %546 = arith.mulf %545, %544 : vector<1x128xf32>
    %547 = arith.addf %542, %546 : vector<1x128xf32>
    %548 = vector.extract_strided_slice %523 {offsets = [0, 5], sizes = [1, 1], strides = [1, 1]} : vector<1x8xf32> to vector<1x1xf32>
    %549 = vector.extract_strided_slice %414 {offsets = [5, 0], sizes = [1, 128], strides = [1, 1]} : vector<8x128xf32> to vector<1x128xf32>
    %550 = vector.broadcast %548 : vector<1x1xf32> to vector<1x128xf32>
    %551 = arith.mulf %550, %549 : vector<1x128xf32>
    %552 = arith.addf %547, %551 : vector<1x128xf32>
    %553 = vector.extract_strided_slice %523 {offsets = [0, 6], sizes = [1, 1], strides = [1, 1]} : vector<1x8xf32> to vector<1x1xf32>
    %554 = vector.extract_strided_slice %414 {offsets = [6, 0], sizes = [1, 128], strides = [1, 1]} : vector<8x128xf32> to vector<1x128xf32>
    %555 = vector.broadcast %553 : vector<1x1xf32> to vector<1x128xf32>
    %556 = arith.mulf %555, %554 : vector<1x128xf32>
    %557 = arith.addf %552, %556 : vector<1x128xf32>
    %558 = vector.extract_strided_slice %523 {offsets = [0, 7], sizes = [1, 1], strides = [1, 1]} : vector<1x8xf32> to vector<1x1xf32>
    %559 = vector.extract_strided_slice %414 {offsets = [7, 0], sizes = [1, 128], strides = [1, 1]} : vector<8x128xf32> to vector<1x128xf32>
    %560 = vector.broadcast %558 : vector<1x1xf32> to vector<1x128xf32>
    %561 = arith.mulf %560, %559 : vector<1x128xf32>
    %562 = arith.addf %557, %561 : vector<1x128xf32>
    %c0_52 = arith.constant 0 : index
    %c0_53 = arith.constant 0 : index
    %563 = vector.load %arg18[%c0_52, %c0_53] : memref<1x1xf32, #tpu.memory_space<vmem>>, vector<1x1xf32>
    %564 = vector.broadcast %563 : vector<1x1xf32> to vector<1x128xf32>
    %565 = arith.addf %562, %564 : vector<1x128xf32>
    %566 = arith.addf %522, %565 : vector<1x128xf32>
    %cst_54 = arith.constant 0.000000e+00 : f32
    %567 = vector.broadcast %cst_54 : f32 to vector<1x128xf32>
    %568 = arith.maximumf %566, %567 : vector<1x128xf32>
    %c0_55 = arith.constant 0 : index
    %c0_56 = arith.constant 0 : index
    %569 = vector.load %arg22[%c0_55, %c0_56] : memref<1x128xf32, #tpu.memory_space<vmem>>, vector<1x128xf32>
    tpu.vector_store %arg22[%c0_55, %c0_56], %568 {strides = array<i32>} : memref<1x128xf32, #tpu.memory_space<vmem>>, vector<1x128xf32>,
    %c0_57 = arith.constant 0 : index
    %c0_58 = arith.constant 0 : index
    %570 = vector.load %arg22[%c0_57, %c0_58] : memref<1x128xf32, #tpu.memory_space<vmem>>, vector<1x8xf32>
    %c0_59 = arith.constant 0 : index
    %c0_60 = arith.constant 0 : index
    %571 = vector.load %arg23[%c0_59, %c0_60] : memref<2x8xf32, #tpu.memory_space<vmem>>, vector<1x8xf32>
    tpu.vector_store %arg23[%c0_59, %c0_60], %570 {strides = array<i32>} : memref<2x8xf32, #tpu.memory_space<vmem>>, vector<1x8xf32>,
    %c0_61 = arith.constant 0 : index
    %c8 = arith.constant 8 : index
    %572 = vector.load %arg22[%c0_61, %c8] : memref<1x128xf32, #tpu.memory_space<vmem>>, vector<1x8xf32>
    %c1 = arith.constant 1 : index
    %c0_62 = arith.constant 0 : index
    %573 = vector.load %arg23[%c1, %c0_62] : memref<2x8xf32, #tpu.memory_space<vmem>>, vector<1x8xf32>
    tpu.vector_store %arg23[%c1, %c0_62], %572 {strides = array<i32>} : memref<2x8xf32, #tpu.memory_space<vmem>>, vector<1x8xf32>,
    %c0_63 = arith.constant 0 : index
    %c0_64 = arith.constant 0 : index
    %574 = vector.load %arg23[%c0_63, %c0_64] : memref<2x8xf32, #tpu.memory_space<vmem>>, vector<2x8xf32>
    %c0_65 = arith.constant 0 : index
    %c0_66 = arith.constant 0 : index
    %575 = vector.load %arg19[%c0_65, %c0_66] : memref<8x3xf32, #tpu.memory_space<vmem>>, vector<8x3xf32>
    %cst_67 = arith.constant dense<0.000000e+00> : vector<2x3xf32>
    %576 = tpu.matmul %574, %575, %cst_67 {dimension_numbers = #tpu.dot_dimension_numbers<[1], [0], [0], [1], [0, 0, 1, 1], [], []>} : vector<2x8xf32>, vector<8x3xf32>, vector<2x3xf32> -> vector<2x3xf32>
    %c0_68 = arith.constant 0 : index
    %c0_69 = arith.constant 0 : index
    %577 = vector.load %arg20[%c0_68, %c0_69] : memref<1x3xf32, #tpu.memory_space<vmem>>, vector<1x3xf32>
    %578 = vector.broadcast %577 : vector<1x3xf32> to vector<2x3xf32>
    %579 = arith.addf %576, %578 : vector<2x3xf32>
    %c0_70 = arith.constant 0 : index
    %c0_71 = arith.constant 0 : index
    %580 = vector.load %arg21[%c0_70, %c0_71] : memref<2x3xf32, #tpu.memory_space<vmem>>, vector<2x3xf32>
    tpu.vector_store %arg21[%c0_70, %c0_71], %579 {strides = array<i32>} : memref<2x3xf32, #tpu.memory_space<vmem>>, vector<2x3xf32>,
    return
  }
  func.func @transform_0(%arg0: i32) -> (i32, i32) {
    %c0_i32 = arith.constant 0 : i32
    %c0_i32_0 = arith.constant 0 : i32
    return %c0_i32, %arg0 : i32, i32
  }
  func.func @transform_1(%arg0: i32) -> (i32, i32) {
    %c0_i32 = arith.constant 0 : i32
    %c0_i32_0 = arith.constant 0 : i32
    %c0_i32_1 = arith.constant 0 : i32
    return %c0_i32, %c0_i32_0 : i32, i32
  }
  func.func @transform_2(%arg0: i32) -> (i32, i32) {
    %c0_i32 = arith.constant 0 : i32
    %c0_i32_0 = arith.constant 0 : i32
    %c0_i32_1 = arith.constant 0 : i32
    return %c0_i32, %c0_i32_0 : i32, i32
  }
  func.func @transform_3(%arg0: i32) -> (i32, i32) {
    %c0_i32 = arith.constant 0 : i32
    %c0_i32_0 = arith.constant 0 : i32
    %c0_i32_1 = arith.constant 0 : i32
    return %c0_i32, %c0_i32_0 : i32, i32
  }
  func.func @transform_4(%arg0: i32) -> (i32, i32) {
    %c0_i32 = arith.constant 0 : i32
    %c0_i32_0 = arith.constant 0 : i32
    %c0_i32_1 = arith.constant 0 : i32
    return %c0_i32, %c0_i32_0 : i32, i32
  }
  func.func @transform_5(%arg0: i32) -> (i32, i32) {
    %c0_i32 = arith.constant 0 : i32
    %c0_i32_0 = arith.constant 0 : i32
    %c0_i32_1 = arith.constant 0 : i32
    return %c0_i32, %c0_i32_0 : i32, i32
  }
  func.func @transform_6(%arg0: i32) -> (i32, i32) {
    %c0_i32 = arith.constant 0 : i32
    %c0_i32_0 = arith.constant 0 : i32
    %c0_i32_1 = arith.constant 0 : i32
    return %c0_i32, %c0_i32_0 : i32, i32
  }
  func.func @transform_7(%arg0: i32) -> (i32, i32) {
    %c0_i32 = arith.constant 0 : i32
    %c0_i32_0 = arith.constant 0 : i32
    %c0_i32_1 = arith.constant 0 : i32
    return %c0_i32, %c0_i32_0 : i32, i32
  }
  func.func @transform_8(%arg0: i32) -> (i32, i32) {
    %c0_i32 = arith.constant 0 : i32
    %c0_i32_0 = arith.constant 0 : i32
    %c0_i32_1 = arith.constant 0 : i32
    return %c0_i32, %c0_i32_0 : i32, i32
  }
  func.func @transform_9(%arg0: i32) -> (i32, i32) {
    %c0_i32 = arith.constant 0 : i32
    %c0_i32_0 = arith.constant 0 : i32
    %c0_i32_1 = arith.constant 0 : i32
    return %c0_i32, %c0_i32_0 : i32, i32
  }
  func.func @transform_10(%arg0: i32) -> (i32, i32) {
    %c0_i32 = arith.constant 0 : i32
    %c0_i32_0 = arith.constant 0 : i32
    %c0_i32_1 = arith.constant 0 : i32
    return %c0_i32, %c0_i32_0 : i32, i32
  }
  func.func @transform_11(%arg0: i32) -> (i32, i32) {
    %c0_i32 = arith.constant 0 : i32
    %c0_i32_0 = arith.constant 0 : i32
    %c0_i32_1 = arith.constant 0 : i32
    return %c0_i32, %c0_i32_0 : i32, i32
  }
  func.func @transform_12(%arg0: i32) -> (i32, i32) {
    %c0_i32 = arith.constant 0 : i32
    %c0_i32_0 = arith.constant 0 : i32
    %c0_i32_1 = arith.constant 0 : i32
    return %c0_i32, %c0_i32_0 : i32, i32
  }
  func.func @transform_13(%arg0: i32) -> (i32, i32) {
    %c0_i32 = arith.constant 0 : i32
    %c0_i32_0 = arith.constant 0 : i32
    %c0_i32_1 = arith.constant 0 : i32
    return %c0_i32, %c0_i32_0 : i32, i32
  }
  func.func @transform_14(%arg0: i32) -> (i32, i32) {
    %c0_i32 = arith.constant 0 : i32
    %c0_i32_0 = arith.constant 0 : i32
    %c0_i32_1 = arith.constant 0 : i32
    return %c0_i32, %c0_i32_0 : i32, i32
  }
  func.func @transform_15(%arg0: i32) -> (i32, i32) {
    %c0_i32 = arith.constant 0 : i32
    %c0_i32_0 = arith.constant 0 : i32
    %c0_i32_1 = arith.constant 0 : i32
    return %c0_i32, %c0_i32_0 : i32, i32
  }
  func.func @transform_16(%arg0: i32) -> (i32, i32) {
    %c0_i32 = arith.constant 0 : i32
    %c0_i32_0 = arith.constant 0 : i32
    %c0_i32_1 = arith.constant 0 : i32
    return %c0_i32, %c0_i32_0 : i32, i32
  }
  func.func @transform_17(%arg0: i32) -> (i32, i32) {
    %c0_i32 = arith.constant 0 : i32
    %c0_i32_0 = arith.constant 0 : i32
    %c0_i32_1 = arith.constant 0 : i32
    return %c0_i32, %c0_i32_0 : i32, i32
  }
  func.func @transform_18(%arg0: i32) -> (i32, i32) {
    %c0_i32 = arith.constant 0 : i32
    %c0_i32_0 = arith.constant 0 : i32
    %c0_i32_1 = arith.constant 0 : i32
    return %c0_i32, %c0_i32_0 : i32, i32
  }
  func.func @transform_19(%arg0: i32) -> (i32, i32) {
    %c0_i32 = arith.constant 0 : i32
    %c0_i32_0 = arith.constant 0 : i32
    %c0_i32_1 = arith.constant 0 : i32
    return %c0_i32, %c0_i32_0 : i32, i32
  }
  func.func @transform_20(%arg0: i32) -> (i32, i32) {
    %c0_i32 = arith.constant 0 : i32
    %c0_i32_0 = arith.constant 0 : i32
    return %arg0, %c0_i32 : i32, i32
  }
}

</mosaic_0001>

<bundles_post_ra>
// kernel: tcn_model_forward.1
= control target key start
LH: loop header
LB: loop body
LE: loop exit
PB: predicated region body
PF: predicated region fallthrough
CT: control target
= control target key end

     0   :  { %s1976_s0 = inlined_call_operand.vmem [shape: f32[4,128], index: 0, kind: input, shape index: {}]   ;;  %s1977_s1 = inlined_call_operand.vmem [shape: s32[1,128], index: 1, kind: input, shape index: {}]   ;;  %s1978_s2 = inlined_call_operand.vmem [shape: f32[8,8], index: 2, kind: input, shape index: {}]   ;;  %s1979_s3 = inlined_call_operand.vmem [shape: f32[8,1], index: 3, kind: input, shape index: {}]   ;;  %s1980_s4 = inlined_call_operand.vmem [shape: f32[8,16], index: 4, kind: input, shape index: {}]   ;;  %s1981_s5 = inlined_call_operand.vmem [shape: f32[8,1], index: 5, kind: input, shape index: {}]   ;;  %s1982_s6 = inlined_call_operand.vmem [shape: f32[8,4], index: 6, kind: input, shape index: {}]   ;;  %s1983_s7 = inlined_call_operand.vmem [shape: f32[8,1], index: 7, kind: input, shape index: {}]   ;;  %s1984_s8 = inlined_call_operand.vmem [shape: f32[8,16], index: 8, kind: input, shape index: {}]   ;;  %s1985_s9 = inlined_call_operand.vmem [shape: f32[8,1], index: 9, kind: input, shape index: {}]   ;;  %s1986_s10 = inlined_call_operand.vmem [shape: f32[8,16], index: 10, kind: input, shape index: {}]   ;;  %s1987_s11 = inlined_call_operand.vmem [shape: f32[8,1], index: 11, kind: input, shape index: {}]   ;;  %s1988_s12 = inlined_call_operand.vmem [shape: f32[1,16], index: 12, kind: input, shape index: {}]   ;;  %s1989_s13 = inlined_call_operand.<no memory space> [shape: f32[1,1], index: 13, kind: input, shape index: {}]   ;;  %s1990_s14 = inlined_call_operand.vmem [shape: f32[1,2], index: 14, kind: input, shape index: {}]   ;;  %s1991_s16 = inlined_call_operand.vmem [shape: f32[1,8], index: 16, kind: input, shape index: {}]   ;;  %s1992_s18 = inlined_call_operand.vmem [shape: f32[8,3], index: 18, kind: input, shape index: {}]   ;;  %s1993_s19 = inlined_call_operand.vmem [shape: f32[1,3], index: 19, kind: input, shape index: {}]   ;;  %s1994_s20 = inlined_call_operand.hbm [shape: f32[2,3], index: 20, kind: output, shape index: {}]   ;;  %s1995_s15 = inlined_call_operand.<no memory space> [shape: f32[1,1], index: 15, kind: input, shape index: {}]   ;;  %s1996_s17 = inlined_call_operand.<no memory space> [shape: f32[1,1], index: 17, kind: input, shape index: {}]  }
   0x1   :  { %1997 = sst [smem:[#allocation10_spill]] %s1976_s0  ;;  %v25_v0 = vstv %s1989_s13  ;;  %v27_v1 = vstv %s1995_s15  ;;  %v29_v2 = vstv %s1996_s17 }
   0x2   :  { %1998 = sst [smem:[#allocation11_spill]] %s1977_s1  ;;  %26 = vst [vmem:[#allocation4] sm:$0x1] %v25_v0  ;;  %28 = vst [vmem:[#allocation5] sm:$0x1] %v27_v1 }
   0x3   :  { %1999 = sst [smem:[#allocation12_spill]] %s1978_s2  ;;  %30 = vst [vmem:[#allocation6] sm:$0x1] %v29_v2 }
   0x4   :  { %2000 = sst [smem:[#allocation13_spill]] %s1979_s3 }
   0x5   :  { %2001 = sst [smem:[#allocation14_spill]] %s1980_s4 }
   0x6   :  { %s2002_s27 = sld [smem:[#allocation12_spill]]  ;;  %v1369_v4 = vmov 2   ;;  %v1370_v5 = vmov 0   ;;  %s2003_s28 = sld [smem:[#allocation10_spill]] }
   0x7   :  { %1256 = vset.pattern.permute.xlu1 %v1369_v4  ;;  %1254 = vset.pattern.permute.xlu0 %v1370_v5 }
   0xc   :  { %v84_v3 = vld [vmem:[%s2002_s27] sm:$0xff] }
   0xd   :  { %106 = vperm.xlu1 %1256, %v84_v3   ;;  %87 = vperm.xlu0 %1254, %v84_v3   ;;  %v1514_v6 = vld [vmem:[%s2003_s28] sm:$0xf] }
   0xe   :  { %31 = vsyncpa [#allocation8], 0  ;;  %v1371_v7 = vmov 1   ;;  %s1372_s17 = smov 1   ;;  %v1373_v8 = vmov 3   ;;  %v1374_v9 = vmov 4   ;;  %v78_v24 = vlaneseq }
   0xf   :  { %v1375_v10 = vmov 5   ;;  %v1376_v11 = vmov 7   ;;  %v1377_v12 = vmov 6   ;;  %s2004_s30 = sld [smem:[#allocation14_spill]]  ;;  %s2005_s1 = sld [smem:[#allocation13_spill]]  ;;  %v1378_v15 = vmov 9  }
  0x10   :  { %v1379_v16 = vmov 12   ;;  %v1553_v17 = vld [vmem:[%s1982_s6] sm:$0xff]  ;;  %v1380_v18 = vmov 8   ;;  %v1381_v20 = vmov 10   ;;  %v1382_v22 = vmov 11   ;;  %s2006_s3 = sld [smem:[#allocation11_spill]] }
  0x11   :  { %1255 = vset.pattern.permute.xlu0 %v1371_v7  ;;  %74 = vrot.lane.b32.xlu1 %v1514_v6, %s1372_s17  ;;  %v370_v19 = vld [vmem:[%s1983_s7] sm:$0xff]  ;;  %v1383_v23 = vmov 13   ;;  %v1591_v26 = vshrl.u32 %v78_v24, 7  ;;  %v1385_v24 = vmov 15   ;;  %vm1389_vm6 = vmmov 0   ;;  %s1391_s23 = smov [#allocation7]  }
  0x12   :  { %96 = vperm.xlu0 %1255, %v84_v3   ;;  %1257 = vset.pattern.permute.xlu1 %v1373_v8  ;;  %v1572_v21 = vld [vmem:[%s1984_s8] sm:$0xff]  ;;  %vm1110_vm7 = vcmask 57344   ;;  %vm1131_vm8 = vcmask 64512   ;;  %s1213_s24 = sshll.u32 %s1391_s23, 4  ;;  %vm1205_vm9 = vcmask 17408   ;;  %s1214_s24 = int_to_ptr.vmem [resolvable:$true] %s1213_s24 }
  0x13   :  { %v1595_v27 = vsub.s32 0, %v1591_v26  ;;  %v1600_v32 = vsub.s32 2, %v1591_v26  ;;  %v1607_v34 = vsub.s32 1, %v1591_v26  ;;  %v1610_v36 = vsub.s32 3, %v1591_v26  ;;  %s1345_s6 = scalar_lea.vmem %s1214_s24, 32  ;;  %p1350_p1 = scmp.lt.s32.totalorder %s1214_s24, %s1214_s24 }
  0x14   :  { %p1346_p0 = scmp.ne.s32.totalorder %s1214_s24, %s1345_s6  ;;  %p1351_p2 = scmp.lt.s32.totalorder %s1345_s6, %s1345_s6 }
  0x15   :  { %116 = vperm.xlu1 %1257, %v84_v3   ;;  %v1527_v13 = vld [vmem:[%s2004_s30] sm:$0xff]  ;;  %v1620_v46 = vrot.slane %v1514_v6, %v1595_v27  ;;  %v1625_v53 = vrot.slane %v1514_v6, %v1607_v34  ;;  %v1629_v56 = vrot.slane %v1514_v6, %v1600_v32  ;;  %v1633_v57 = vrot.slane %v1514_v6, %v1610_v36 }
  0x16   :  { %1258 = vset.pattern.permute.xlu0 %v1374_v9  ;;  %v165_v14 = vld [vmem:[%s2005_s1] sm:$0xff]  ;;  %v1384_v6 = vmov 14   ;;  %s1390_s1 = smov 120   ;;  %p1352_p3 = por %p1351_p2, %p1350_p1 }
  0x17   :  { %126 = vperm.xlu0 %1258, %v84_v3   ;;  %v1589_v25 = vld [vmem:[%s2006_s3] sm:$0x1] }
  0x18   :  { %vm76_vm0 = vcmp.ge.s32.totalorder %v1589_v25, 1  ;;  %vm381_vm2 = vcmp.ge.s32.totalorder %v1589_v25, 2  ;;  %vm734_vm4 = vcmp.ge.s32.totalorder %v1589_v25, 4  ;;  %p1353_p4 = pnand %p1352_p3, %p1346_p0 }
  0x19   :  { %1259 = vset.pattern.permute.xlu1 %v1375_v10  ;;  %v77_v28 = vsel %vm76_vm0, 1, %v1370_v5 }
  0x1a   :  { %136 = vperm.xlu1 %1259, %v84_v3   ;;  %v81_v29 = vrot.slane %v77_v28, %v1595_v27  ;;  %v337_v28 = vld [vmem:[%s1981_s5] sm:$0xff] }
  0x1b   :  { %1261 = vset.pattern.permute.xlu0 %v1376_v11 }
  0x1c   :  { %156 = vperm.xlu0 %1261, %v84_v3   ;;  %vm1602_vm1 = vcmp.eq.s32.totalorder %v81_v29, 1 }
  0x1e   :  { %1260 = vset.pattern.permute.xlu1 %v1377_v12 }
  0x1f   :  { %146 = vperm.xlu1 %1260, %v84_v3  }
  0x20   :  { %1263 = vset.pattern.permute.xlu0 %v1371_v7 }
  0x21   :  { %188 = vperm.xlu0 %1263, %v1527_v13  }
  0x23   :  { %1262 = vset.pattern.permute.xlu1 %v1370_v5 }
  0x24   :  { %168 = vperm.xlu1 %1262, %v165_v14  }
  0x25   :  { %1265 = vset.pattern.permute.xlu0 %v1373_v8 }
  0x26   :  { %208 = vperm.xlu0 %1265, %v1527_v13  }
  0x28   :  { %179 = vperm.xlu1 %1262, %v1527_v13  }
  0x2a   :  { %1268 = vset.pattern.permute.xlu0 %v1377_v12 }
  0x2b   :  { %238 = vperm.xlu0 %1268, %v1527_v13  }
  0x2c   :  { %1264 = vset.pattern.permute.xlu1 %v1369_v4 }
  0x2d   :  { %198 = vperm.xlu1 %1264, %v1527_v13  }
  0x2f   :  { %1271 = vset.pattern.permute.xlu0 %v1378_v15 }
  0x30   :  { %268 = vperm.xlu0 %1271, %v1527_v13  }
  0x31   :  { %1266 = vset.pattern.permute.xlu1 %v1374_v9 }
  0x32   :  { %218 = vperm.xlu1 %1266, %v1527_v13  }
  0x34   :  { %1274 = vset.pattern.permute.xlu0 %v1379_v16 }
  0x35   :  { %298 = vperm.xlu0 %1274, %v1527_v13  }
  0x36   :  { %1267 = vset.pattern.permute.xlu1 %v1375_v10 }
  0x37   :  { %228 = vperm.xlu1 %1267, %v1527_v13  }
  0x39   :  { %1277 = vset.pattern.permute.xlu0 %v1370_v5 }
  0x3a   :  { %348 = vperm.xlu0 %1277, %v1553_v17  }
  0x3b   :  { %1269 = vset.pattern.permute.xlu1 %v1376_v11 }
  0x3c   :  { %248 = vperm.xlu1 %1269, %v1527_v13  }
  0x3e   :  { %1280 = vset.pattern.permute.xlu0 %v1369_v4 }
  0x3f   :  { %359 = vperm.xlu0 %1280, %v1553_v17  }
  0x40   :  { %1270 = vset.pattern.permute.xlu1 %v1380_v18 }
  0x41   :  { %258 = vperm.xlu1 %1270, %v1527_v13  }
  0x43   :  { %1283 = vset.pattern.permute.xlu0 %v1370_v5 }
  0x44   :  { %373 = vperm.xlu0 %1283, %v370_v19  }
  0x45   :  { %1272 = vset.pattern.permute.xlu1 %v1381_v20 }
  0x46   :  { %278 = vperm.xlu1 %1272, %v1527_v13  }
  0x48   :  { %1285 = vset.pattern.permute.xlu0 %v1369_v4 }
  0x49   :  { %411 = vperm.xlu0 %1285, %v1572_v21  }
  0x4a   :  { %1273 = vset.pattern.permute.xlu1 %v1382_v22 }
  0x4d   :  { %1287 = vset.pattern.permute.xlu0 %v1374_v9 }
  0x4e   :  { %431 = vperm.xlu0 %1287, %v1572_v21  }
  0x52   :  { %1290 = vset.pattern.permute.xlu0 %v1376_v11 }
  0x53   :  { %461 = vperm.xlu0 %1290, %v1572_v21  }
  0x57   :  { %1293 = vset.pattern.permute.xlu0 %v1381_v20 }
  0x58   :  { %491 = vperm.xlu0 %1293, %v1572_v21  }
  0x5c   :  { %1296 = vset.pattern.permute.xlu0 %v1383_v23 }
  0x5d   :  { %521 = vperm.xlu0 %1296, %v1572_v21  }
  0x61   :  { %1299 = vset.pattern.permute.xlu0 %v1370_v5 }
  0x8c   :  { %v107_v30 = vpop.permute.xlu1 %106  ;;  %v88_v31 = vpop.permute.xlu0 %87 }
  0x90   :  { %v75_v35 = vpop.permute.xlu1 %74 }
  0x91   :  { %v83_v37 = vsel %vm1602_vm1, %v75_v35, 0.0  ;;  %v97_v38 = vpop.permute.xlu0 %96 }
  0x92   :  { %v93_v39 = vrot.slane %v83_v37, %v1595_v27  ;;  %v112_v40 = vrot.slane %v83_v37, %v1600_v32  ;;  %v102_v41 = vrot.slane %v83_v37, %v1607_v34  ;;  %v122_v45 = vrot.slane %v83_v37, %v1610_v36 }
  0x94   :  { %v94_v42 = vmul.f32 %v93_v39, %v88_v31  ;;  %v103_v43 = vmul.f32 %v102_v41, %v97_v38  ;;  %v117_v44 = vpop.permute.xlu1 %116  ;;  %v113_v48 = vmul.f32 %v112_v40, %v107_v30 }
  0x95   :  { %v123_v51 = vmul.f32 %v122_v45, %v117_v44 }
  0x96   :  { %v104_v47 = vadd.f32 %v103_v43, %v94_v42  ;;  %v127_v49 = vpop.permute.xlu0 %126 }
  0x97   :  { %v133_v52 = vmul.f32 %v1620_v46, %v127_v49 }
  0x98   :  { %v114_v50 = vadd.f32 %v113_v48, %v104_v47  ;;  %v1692_v48 = vsub.s32 4, %v1591_v26 }
  0x99   :  { %v137_v54 = vpop.permute.xlu1 %136 }
  0x9a   :  { %v124_v55 = vadd.f32 %v123_v51, %v114_v50  ;;  %v143_v59 = vmul.f32 %v1625_v53, %v137_v54 }
  0x9b   :  { %v157_v60 = vpop.permute.xlu0 %156 }
  0x9c   :  { %v134_v58 = vadd.f32 %v133_v52, %v124_v55  ;;  %v163_v0 = vmul.f32 %v1633_v57, %v157_v60  ;;  %v1696_v52 = vsub.s32 5, %v1591_v26 }
  0x9e   :  { %v144_v61 = vadd.f32 %v143_v59, %v134_v58  ;;  %v147_v62 = vpop.permute.xlu1 %146 }
  0x9f   :  { %v153_v63 = vmul.f32 %v1629_v56, %v147_v62  ;;  %v1701_v62 = vsub.s32 6, %v1591_v26 }
  0xa0   :  { %v189_v39 = vpop.permute.xlu0 %188 }
  0xa1   :  { %v154_v1 = vadd.f32 %v153_v63, %v144_v61 }
  0xa3   :  { %v164_v2 = vadd.f32 %v163_v0, %v154_v1  ;;  %v169_v3 = vpop.permute.xlu1 %168 }
  0xa5   :  { %v171_v14 = vadd.f32 %v169_v3, %v164_v2  ;;  %v209_v43 = vpop.permute.xlu0 %208  ;;  %v1705_v2 = vsub.s32 7, %v1591_v26 }
  0xa7   :  { %v1638_v19 = vmax.f32 %v171_v14, 0.0  ;;  %v180_v29 = vpop.permute.xlu1 %179 }
  0xa9   :  { %173 = vrot.lane.b32.xlu1 %v1638_v19, %s1372_s17 }
  0xaa   :  { %v239_v58 = vpop.permute.xlu0 %238 }
  0xac   :  { %v199_v30 = vpop.permute.xlu1 %198 }
  0xad   :  { %288 = vperm.xlu1 %1273, %v1527_v13  }
  0xb1   :  { %1275 = vset.pattern.permute.xlu1 %v1383_v23  ;;  %v219_v31 = vpop.permute.xlu1 %218 }
  0xb2   :  { %308 = vperm.xlu1 %1275, %v1527_v13  }
  0xb6   :  { %1276 = vset.pattern.permute.xlu1 %v1384_v6  ;;  %v229_v35 = vpop.permute.xlu1 %228 }
  0xb7   :  { %318 = vperm.xlu1 %1276, %v1527_v13  }
  0xbb   :  { %1278 = vset.pattern.permute.xlu1 %v1371_v7  ;;  %v249_v37 = vpop.permute.xlu1 %248 }
  0xbc   :  { %353 = vperm.xlu1 %1278, %v1553_v17  }
  0xc0   :  { %1279 = vset.pattern.permute.xlu1 %v1385_v24  ;;  %v259_v38 = vpop.permute.xlu1 %258 }
  0xc1   :  { %328 = vperm.xlu1 %1279, %v1527_v13   ;;  %v550_v13 = vld [vmem:[%s1985_s9] sm:$0xff]  ;;  %s1386_s9 = smov 2  }
  0xc2   :  { %553 = vperm.xlu0 %1299, %v550_v13   ;;  %v269_v13 = vpop.permute.xlu0 %268 }
  0xc5   :  { %1281 = vset.pattern.permute.xlu1 %v1373_v8  ;;  %v279_v40 = vpop.permute.xlu1 %278 }
  0xc6   :  { %365 = vperm.xlu1 %1281, %v1553_v17   ;;  %1302 = vset.pattern.permute.xlu0 %v1369_v4  ;;  %v1673_v17 = vld [vmem:[%s1986_s10] sm:$0xff]  ;;  %v299_v26 = vpop.permute.xlu0 %298 }
  0xc7   :  { %583 = vperm.xlu0 %1302, %v1673_v17  }
  0xca   :  { %1282 = vset.pattern.permute.xlu1 %v1370_v5 }
  0xcb   :  { %340 = vperm.xlu1 %1282, %v337_v28   ;;  %1304 = vset.pattern.permute.xlu0 %v1374_v9 }
  0xcc   :  { %603 = vperm.xlu0 %1304, %v1673_v17  }
  0xcf   :  { %392 = vperm.xlu1 %1282, %v1572_v21  }
  0xd0   :  { %1307 = vset.pattern.permute.xlu0 %v1376_v11 }
  0xd1   :  { %633 = vperm.xlu0 %1307, %v1673_v17  }
  0xd3   :  { %1284 = vset.pattern.permute.xlu1 %v1371_v7 }
  0xd4   :  { %401 = vperm.xlu1 %1284, %v1572_v21  }
  0xd5   :  { %1310 = vset.pattern.permute.xlu0 %v1381_v20 }
  0xd6   :  { %663 = vperm.xlu0 %1310, %v1673_v17  }
  0xd8   :  { %1286 = vset.pattern.permute.xlu1 %v1373_v8 }
  0xd9   :  { %421 = vperm.xlu1 %1286, %v1572_v21  }
  0xda   :  { %1313 = vset.pattern.permute.xlu0 %v1383_v23 }
  0xdb   :  { %693 = vperm.xlu0 %1313, %v1673_v17  }
  0xdd   :  { %1288 = vset.pattern.permute.xlu1 %v1375_v10 }
  0xde   :  { %441 = vperm.xlu1 %1288, %v1572_v21  }
  0xdf   :  { %1316 = vset.pattern.permute.xlu0 %v1370_v5 }
  0xe2   :  { %1289 = vset.pattern.permute.xlu1 %v1377_v12 }
  0xe3   :  { %451 = vperm.xlu1 %1289, %v1572_v21  }
  0xe7   :  { %1291 = vset.pattern.permute.xlu1 %v1380_v18 }
 0x11b   :  { %v174_v41 = vpop.permute.xlu1 %173 }
 0x11c   :  { %v175_v42 = vsel %vm1602_vm1, %v174_v41, 0.0 }
 0x11d   :  { %v185_v44 = vrot.slane %v175_v42, %v1595_v27  ;;  %v194_v45 = vrot.slane %v175_v42, %v1607_v34  ;;  %v204_v47 = vrot.slane %v175_v42, %v1600_v32  ;;  %v214_v51 = vrot.slane %v175_v42, %v1610_v36 }
 0x11e   :  { %v224_v55 = vrot.slane %v175_v42, %v1692_v48  ;;  %v234_v60 = vrot.slane %v175_v42, %v1696_v52  ;;  %v244_v1 = vrot.slane %v175_v42, %v1701_v62  ;;  %v254_v28 = vrot.slane %v175_v42, %v1705_v2 }
 0x11f   :  { %v186_v49 = vmul.f32 %v185_v44, %v180_v29  ;;  %v195_v50 = vmul.f32 %v194_v45, %v189_v39  ;;  %v205_v33 = vmul.f32 %v204_v47, %v199_v30  ;;  %v215_v59 = vmul.f32 %v214_v51, %v209_v43 }
 0x120   :  { %v225_v0 = vmul.f32 %v224_v55, %v219_v31  ;;  %v235_v14 = vmul.f32 %v234_v60, %v229_v35  ;;  %v245_v30 = vmul.f32 %v244_v1, %v239_v58  ;;  %v264_v39 = vrot.slane %v1638_v19, %v1595_v27 }
 0x121   :  { %v196_v54 = vadd.f32 %v195_v50, %v186_v49  ;;  %v255_v43 = vmul.f32 %v254_v28, %v249_v37  ;;  %v274_v47 = vrot.slane %v1638_v19, %v1607_v34  ;;  %v284_v42 = vrot.slane %v1638_v19, %v1600_v32 }
 0x122   :  { %v265_v45 = vmul.f32 %v264_v39, %v259_v38  ;;  %v294_v37 = vrot.slane %v1638_v19, %v1610_v36 }
 0x123   :  { %v206_v61 = vadd.f32 %v205_v33, %v196_v54  ;;  %v275_v50 = vmul.f32 %v274_v47, %v269_v13  ;;  %v349_v54 = vpop.permute.xlu0 %348  ;;  %v285_v33 = vmul.f32 %v284_v42, %v279_v40  ;;  %v314_v13 = vrot.slane %v1638_v19, %v1696_v52 }
 0x124   :  { %v351_v60 = vmul.f32 %v349_v54, %v1620_v46  ;;  %v324_v46 = vrot.slane %v1638_v19, %v1701_v62 }
 0x125   :  { %v216_v63 = vadd.f32 %v215_v59, %v206_v61  ;;  %v304_v61 = vrot.slane %v1638_v19, %v1692_v48 }
 0x127   :  { %v226_v3 = vadd.f32 %v225_v0, %v216_v63  ;;  %v360_v59 = vpop.permute.xlu0 %359 }
 0x129   :  { %v236_v29 = vadd.f32 %v235_v14, %v226_v3  ;;  %v362_v3 = vmul.f32 %v360_v59, %v1629_v56  ;;  %v305_v14 = vmul.f32 %v304_v61, %v299_v26 }
 0x12b   :  { %v246_v41 = vadd.f32 %v245_v30, %v236_v29  ;;  %v374_v42 = vpop.permute.xlu0 %373 }
 0x12c   :  { %v289_v44 = vpop.permute.xlu1 %288 }
 0x12d   :  { %v256_v31 = vadd.f32 %v255_v43, %v246_v41  ;;  %v295_v38 = vmul.f32 %v294_v37, %v289_v44  ;;  %v334_v43 = vrot.slane %v1638_v19, %v1705_v2 }
 0x12f   :  { %v266_v49 = vadd.f32 %v265_v45, %v256_v31 }
 0x131   :  { %v309_v35 = vpop.permute.xlu1 %308  ;;  %v276_v51 = vadd.f32 %v275_v50, %v266_v49 }
 0x132   :  { %v315_v39 = vmul.f32 %v314_v13, %v309_v35 }
 0x133   :  { %v286_v58 = vadd.f32 %v285_v33, %v276_v51 }
 0x135   :  { %v296_v63 = vadd.f32 %v295_v38, %v286_v58  ;;  %v382_v38 = vsel %vm381_vm2, 1, %v1370_v5 }
 0x136   :  { %v319_v55 = vpop.permute.xlu1 %318 }
 0x137   :  { %v306_v28 = vadd.f32 %v305_v14, %v296_v63  ;;  %v325_v44 = vmul.f32 %v324_v46, %v319_v55 }
 0x139   :  { %v316_v41 = vadd.f32 %v315_v39, %v306_v28 }
 0x13b   :  { %v354_v0 = vpop.permute.xlu1 %353  ;;  %v326_v31 = vadd.f32 %v325_v44, %v316_v41 }
 0x13c   :  { %v356_v1 = vmul.f32 %v354_v0, %v1625_v53 }
 0x13e   :  { %v357_v40 = vadd.f32 %v356_v1, %v351_v60  ;;  %v386_v60 = vrot.slane %v382_v38, %v1595_v27 }
 0x140   :  { %v363_v29 = vadd.f32 %v362_v3, %v357_v40  ;;  %v329_v30 = vpop.permute.xlu1 %328  ;;  %vm1770_vm3 = vcmp.eq.s32.totalorder %v386_v60, 1  ;;  %v412_v40 = vpop.permute.xlu0 %411 }
 0x141   :  { %v335_v53 = vmul.f32 %v334_v43, %v329_v30 }
 0x143   :  { %v336_v26 = vadd.f32 %v335_v53, %v326_v31 }
 0x144   :  { %v432_v53 = vpop.permute.xlu0 %431 }
 0x145   :  { %v366_v45 = vpop.permute.xlu1 %365 }
 0x146   :  { %v368_v56 = vmul.f32 %v366_v45, %v1633_v57  ;;  %v1760_v57 = vld [vmem:[%s1988_s12] sm:$0x1] }
 0x148   :  { %v369_v47 = vadd.f32 %v368_v56, %v363_v29 }
 0x14a   :  { %v341_v49 = vpop.permute.xlu1 %340  ;;  %v376_v51 = vadd.f32 %v374_v42, %v369_v47 }
 0x14b   :  { %v343_v50 = vadd.f32 %v341_v49, %v336_v26 }
 0x14d   :  { %v344_v35 = vmax.f32 %v343_v50, 0.0 }
 0x14e   :  { %v393_v19 = vpop.permute.xlu1 %392 }
 0x14f   :  { %v377_v54 = vadd.f32 %v376_v51, %v344_v35  ;;  %v462_v51 = vpop.permute.xlu0 %461 }
 0x151   :  { %v1728_v33 = vmax.f32 %v377_v54, 0.0 }
 0x153   :  { %379 = vrot.lane.b32.xlu1 %v1728_v33, %s1386_s9  ;;  %v402_v55 = vpop.permute.xlu1 %401  ;;  %v487_v38 = vrot.slane %v1728_v33, %v1607_v34 }
 0x157   :  { %471 = vperm.xlu1 %1291, %v1572_v21  }
 0x158   :  { %v422_v58 = vpop.permute.xlu1 %421 }
 0x15b   :  { %1292 = vset.pattern.permute.xlu1 %v1378_v15 }
 0x15c   :  { %481 = vperm.xlu1 %1292, %v1572_v21  }
 0x15d   :  { %v442_v37 = vpop.permute.xlu1 %441 }
 0x160   :  { %1294 = vset.pattern.permute.xlu1 %v1382_v22 }
 0x161   :  { %501 = vperm.xlu1 %1294, %v1572_v21  }
 0x162   :  { %v452_v59 = vpop.permute.xlu1 %451 }
 0x165   :  { %1295 = vset.pattern.permute.xlu1 %v1379_v16 }
 0x166   :  { %511 = vperm.xlu1 %1295, %v1572_v21  }
 0x16a   :  { %1297 = vset.pattern.permute.xlu1 %v1384_v6 }
 0x16b   :  { %531 = vperm.xlu1 %1297, %v1572_v21  }
 0x16f   :  { %1298 = vset.pattern.permute.xlu1 %v1385_v24 }
 0x170   :  { %541 = vperm.xlu1 %1298, %v1572_v21   ;;  %v722_v21 = vld [vmem:[%s1987_s11] sm:$0xff] }
 0x171   :  { %725 = vperm.xlu0 %1316, %v722_v21  }
 0x174   :  { %1300 = vset.pattern.permute.xlu1 %v1370_v5 }
 0x175   :  { %564 = vperm.xlu1 %1300, %v1673_v17   ;;  %1319 = vset.pattern.permute.xlu0 %v1369_v4 }
 0x176   :  { %767 = vperm.xlu0 %1319, %v1760_v57  }
 0x179   :  { %1301 = vset.pattern.permute.xlu1 %v1371_v7 }
 0x17a   :  { %573 = vperm.xlu1 %1301, %v1673_v17   ;;  %1323 = vset.pattern.permute.xlu0 %v1377_v12 }
 0x17b   :  { %819 = vperm.xlu0 %1323, %v1760_v57  }
 0x17e   :  { %1303 = vset.pattern.permute.xlu1 %v1373_v8 }
 0x17f   :  { %593 = vperm.xlu1 %1303, %v1673_v17   ;;  %1326 = vset.pattern.permute.xlu0 %v1378_v15 }
 0x183   :  { %1305 = vset.pattern.permute.xlu1 %v1375_v10 }
 0x184   :  { %613 = vperm.xlu1 %1305, %v1673_v17  }
 0x188   :  { %1306 = vset.pattern.permute.xlu1 %v1377_v12 }
 0x189   :  { %623 = vperm.xlu1 %1306, %v1673_v17  }
 0x18d   :  { %1308 = vset.pattern.permute.xlu1 %v1380_v18 }
 0x1c5   :  { %v380_v63 = vpop.permute.xlu1 %379 }
 0x1c6   :  { %v388_v0 = vsel %vm1770_vm3, %v380_v63, 0.0 }
 0x1c7   :  { %v398_v1 = vrot.slane %v388_v0, %v1595_v27  ;;  %v407_v3 = vrot.slane %v388_v0, %v1607_v34  ;;  %v417_v14 = vrot.slane %v388_v0, %v1600_v32  ;;  %v427_v29 = vrot.slane %v388_v0, %v1610_v36 }
 0x1c8   :  { %v437_v41 = vrot.slane %v388_v0, %v1692_v48  ;;  %v447_v44 = vrot.slane %v388_v0, %v1696_v52  ;;  %v457_v31 = vrot.slane %v388_v0, %v1701_v62  ;;  %v467_v49 = vrot.slane %v388_v0, %v1705_v2 }
 0x1c9   :  { %v399_v28 = vmul.f32 %v398_v1, %v393_v19  ;;  %v408_v13 = vmul.f32 %v407_v3, %v402_v55  ;;  %v418_v39 = vmul.f32 %v417_v14, %v412_v40  ;;  %v428_v43 = vmul.f32 %v427_v29, %v422_v58 }
 0x1ca   :  { %v438_v56 = vmul.f32 %v437_v41, %v432_v53  ;;  %v448_v26 = vmul.f32 %v447_v44, %v442_v37  ;;  %v458_v42 = vmul.f32 %v457_v31, %v452_v59  ;;  %v468_v54 = vmul.f32 %v467_v49, %v462_v51  ;;  %v492_v59 = vpop.permute.xlu0 %491 }
 0x1cb   :  { %v409_v30 = vadd.f32 %v408_v13, %v399_v28  ;;  %v477_v19 = vrot.slane %v1728_v33, %v1595_v27  ;;  %v497_v37 = vrot.slane %v1728_v33, %v1600_v32  ;;  %v507_v40 = vrot.slane %v1728_v33, %v1610_v36 }
 0x1cc   :  { %v517_v29 = vrot.slane %v1728_v33, %v1692_v48 }
 0x1cd   :  { %v419_v46 = vadd.f32 %v418_v39, %v409_v30  ;;  %v498_v3 = vmul.f32 %v497_v37, %v492_v59  ;;  %v527_v39 = vrot.slane %v1728_v33, %v1696_v52 }
 0x1cf   :  { %v429_v45 = vadd.f32 %v428_v43, %v419_v46  ;;  %v522_v43 = vpop.permute.xlu0 %521 }
 0x1d0   :  { %v528_v53 = vmul.f32 %v527_v39, %v522_v43 }
 0x1d1   :  { %v439_v47 = vadd.f32 %v438_v56, %v429_v45  ;;  %v537_v56 = vrot.slane %v1728_v33, %v1701_v62 }
 0x1d3   :  { %v449_v50 = vadd.f32 %v448_v26, %v439_v47  ;;  %v547_v26 = vrot.slane %v1728_v33, %v1705_v2 }
 0x1d5   :  { %v459_v35 = vadd.f32 %v458_v42, %v449_v50 }
 0x1d6   :  { %v472_v21 = vpop.permute.xlu1 %471 }
 0x1d7   :  { %v469_v55 = vadd.f32 %v468_v54, %v459_v35  ;;  %v478_v58 = vmul.f32 %v477_v19, %v472_v21  ;;  %v554_v35 = vpop.permute.xlu0 %553 }
 0x1d9   :  { %v479_v63 = vadd.f32 %v478_v58, %v469_v55 }
 0x1db   :  { %v482_v60 = vpop.permute.xlu1 %481 }
 0x1dc   :  { %v488_v0 = vmul.f32 %v487_v38, %v482_v60  ;;  %v584_v38 = vpop.permute.xlu0 %583 }
 0x1de   :  { %v489_v1 = vadd.f32 %v488_v0, %v479_v63 }
 0x1e0   :  { %v502_v14 = vpop.permute.xlu1 %501  ;;  %v499_v28 = vadd.f32 %v498_v3, %v489_v1 }
 0x1e1   :  { %v508_v13 = vmul.f32 %v507_v40, %v502_v14  ;;  %v604_v14 = vpop.permute.xlu0 %603 }
 0x1e3   :  { %v509_v41 = vadd.f32 %v508_v13, %v499_v28 }
 0x1e5   :  { %v512_v30 = vpop.permute.xlu1 %511  ;;  %v634_v43 = vpop.permute.xlu0 %633 }
 0x1e6   :  { %v518_v46 = vmul.f32 %v517_v29, %v512_v30  ;;  %v1095_v30 = vld [vmem:[#allocation6] sm:$0x1] }
 0x1e8   :  { %v519_v44 = vadd.f32 %v518_v46, %v509_v41 }
 0x1ea   :  { %v532_v45 = vpop.permute.xlu1 %531  ;;  %v529_v31 = vadd.f32 %v528_v53, %v519_v44 }
 0x1eb   :  { %v538_v47 = vmul.f32 %v537_v56, %v532_v45 }
 0x1ed   :  { %v539_v50 = vadd.f32 %v538_v47, %v529_v31 }
 0x1ef   :  { %v542_v49 = vpop.permute.xlu1 %541 }
 0x1f0   :  { %v548_v42 = vmul.f32 %v547_v26, %v542_v49 }
 0x1f2   :  { %v549_v51 = vadd.f32 %v548_v42, %v539_v50 }
 0x1f4   :  { %v556_v54 = vadd.f32 %v554_v35, %v549_v51  ;;  %v664_v35 = vpop.permute.xlu0 %663 }
 0x1f6   :  { %v1800_v21 = vmax.f32 %v556_v54, 0.0 }
 0x1f8   :  { %558 = vrot.lane.b32.xlu1 %v1800_v21, %s1386_s9  ;;  %v649_v45 = vrot.slane %v1800_v21, %v1595_v27  ;;  %v659_v47 = vrot.slane %v1800_v21, %v1607_v34  ;;  %v669_v49 = vrot.slane %v1800_v21, %v1600_v32 }
 0x1fa   :  { %v670_v54 = vmul.f32 %v669_v49, %v664_v35 }
 0x1fc   :  { %643 = vperm.xlu1 %1308, %v1673_v17  }
 0x200   :  { %1309 = vset.pattern.permute.xlu1 %v1378_v15  ;;  %v565_v15 = vpop.permute.xlu1 %564 }
 0x201   :  { %653 = vperm.xlu1 %1309, %v1673_v17  }
 0x205   :  { %1311 = vset.pattern.permute.xlu1 %v1382_v22 }
 0x206   :  { %673 = vperm.xlu1 %1311, %v1673_v17  }
 0x20a   :  { %1312 = vset.pattern.permute.xlu1 %v1379_v16 }
 0x20b   :  { %683 = vperm.xlu1 %1312, %v1673_v17  }
 0x20f   :  { %1314 = vset.pattern.permute.xlu1 %v1384_v6 }
 0x210   :  { %703 = vperm.xlu1 %1314, %v1673_v17  }
 0x214   :  { %1315 = vset.pattern.permute.xlu1 %v1385_v24 }
 0x215   :  { %713 = vperm.xlu1 %1315, %v1673_v17  }
 0x219   :  { %1317 = vset.pattern.permute.xlu1 %v1371_v7 }
 0x21a   :  { %754 = vperm.xlu1 %1317, %v1760_v57  }
 0x21e   :  { %1318 = vset.pattern.permute.xlu1 %v1370_v5 }
 0x21f   :  { %745 = vperm.xlu1 %1318, %v1760_v57  }
 0x223   :  { %1320 = vset.pattern.permute.xlu1 %v1373_v8 }
 0x224   :  { %780 = vperm.xlu1 %1320, %v1760_v57  }
 0x228   :  { %1321 = vset.pattern.permute.xlu1 %v1374_v9 }
 0x229   :  { %793 = vperm.xlu1 %1321, %v1760_v57  }
 0x22d   :  { %1322 = vset.pattern.permute.xlu1 %v1375_v10 }
 0x22e   :  { %806 = vperm.xlu1 %1322, %v1760_v57  }
 0x232   :  { %1324 = vset.pattern.permute.xlu1 %v1376_v11 }
 0x233   :  { %832 = vperm.xlu1 %1324, %v1760_v57  }
 0x237   :  { %1325 = vset.pattern.permute.xlu1 %v1380_v18  ;;  %v945_v18 = vld [vmem:[#allocation4] sm:$0x1] }
 0x238   :  { %845 = vperm.xlu1 %1325, %v1760_v57  }
 0x23c   :  { %1327 = vset.pattern.permute.xlu1 %v1381_v20  ;;  %v574_v20 = vpop.permute.xlu1 %573 }
 0x23d   :  { %868 = vperm.xlu1 %1327, %v1760_v57  }
 0x241   :  { %1328 = vset.pattern.permute.xlu1 %v1382_v22  ;;  %v1841_v22 = vld [vmem:[%s1991_s16] sm:$0x1] }
 0x242   :  { %881 = vperm.xlu1 %1328, %v1760_v57  }
 0x246   :  { %1330 = vset.pattern.permute.xlu1 %v1383_v23  ;;  %v594_v23 = vpop.permute.xlu1 %593 }
 0x247   :  { %907 = vperm.xlu1 %1330, %v1760_v57  }
 0x24b   :  { %1331 = vset.pattern.permute.xlu1 %v1384_v6  ;;  %v614_v6 = vpop.permute.xlu1 %613 }
 0x24c   :  { %920 = vperm.xlu1 %1331, %v1760_v57  }
 0x24f   :  { %v624_v17 = vpop.permute.xlu1 %623 }
 0x250   :  { %1333 = vset.pattern.permute.xlu1 %v1370_v5 }
 0x251   :  { %948 = vperm.xlu1 %1333, %v945_v18   ;;  %v679_v18 = vrot.slane %v1800_v21, %v1610_v36 }
 0x255   :  { %1334 = vset.pattern.permute.xlu1 %v1371_v7 }
 0x256   :  { %1005 = vperm.xlu1 %1334, %v1841_v22  }
 0x25a   :  { %1336 = vset.pattern.permute.xlu1 %v1369_v4 }
 0x25b   :  { %1018 = vperm.xlu1 %1336, %v1841_v22  }
 0x25f   :  { %1337 = vset.pattern.permute.xlu1 %v1373_v8 }
 0x260   :  { %1031 = vperm.xlu1 %1337, %v1841_v22  }
 0x264   :  { %1339 = vset.pattern.permute.xlu1 %v1375_v10  ;;  %v1861_v10 = vld [vmem:[%s1990_s14] sm:$0x1]  ;;  %s1387_s14 = smov 4  }
 0x265   :  { %1057 = vperm.xlu1 %1339, %v1841_v22  }
 0x269   :  { %1340 = vset.pattern.permute.xlu1 %v1377_v12 }
 0x26a   :  { %1070 = vperm.xlu1 %1340, %v1841_v22   ;;  %v559_v19 = vpop.permute.xlu1 %558 }
 0x26b   :  { %v560_v4 = vsel %vm1770_vm3, %v559_v19, 0.0 }
 0x26c   :  { %v570_v55 = vrot.slane %v560_v4, %v1595_v27  ;;  %v579_v58 = vrot.slane %v560_v4, %v1607_v34  ;;  %v589_v8 = vrot.slane %v560_v4, %v1600_v32  ;;  %v599_v37 = vrot.slane %v560_v4, %v1610_v36 }
 0x26d   :  { %v609_v0 = vrot.slane %v560_v4, %v1692_v48  ;;  %v619_v3 = vrot.slane %v560_v4, %v1696_v52  ;;  %v629_v28 = vrot.slane %v560_v4, %v1701_v62  ;;  %v639_v39 = vrot.slane %v560_v4, %v1705_v2  ;;  %v694_v4 = vpop.permute.xlu0 %693 }
 0x26e   :  { %1342 = vset.pattern.permute.xlu1 %v1371_v7  ;;  %v571_v12 = vmul.f32 %v570_v55, %v565_v15  ;;  %v580_v60 = vmul.f32 %v579_v58, %v574_v20  ;;  %v590_v63 = vmul.f32 %v589_v8, %v584_v38  ;;  %v600_v59 = vmul.f32 %v599_v37, %v594_v23 }
 0x26f   :  { %972 = vperm.xlu1 %1342, %v1861_v10   ;;  %v610_v40 = vmul.f32 %v609_v0, %v604_v14  ;;  %v620_v29 = vmul.f32 %v619_v3, %v614_v6  ;;  %v630_v46 = vmul.f32 %v629_v28, %v624_v17  ;;  %v640_v53 = vmul.f32 %v639_v39, %v634_v43 }
 0x270   :  { %v581_v61 = vadd.f32 %v580_v60, %v571_v12  ;;  %v689_v6 = vrot.slane %v1800_v21, %v1692_v48  ;;  %v699_v34 = vrot.slane %v1800_v21, %v1696_v52  ;;  %v709_v38 = vrot.slane %v1800_v21, %v1701_v62  ;;  %v981_v62 = vld [vmem:[#allocation5] sm:$0x1] }
 0x271   :  { %v719_v60 = vrot.slane %v1800_v21, %v1705_v2 }
 0x272   :  { %v591_v1 = vadd.f32 %v590_v63, %v581_v61  ;;  %v700_v58 = vmul.f32 %v699_v34, %v694_v4  ;;  %v726_v63 = vpop.permute.xlu0 %725 }
 0x273   :  { %1343 = vset.pattern.permute.xlu1 %v1376_v11 }
 0x274   :  { %1083 = vperm.xlu1 %1343, %v1841_v22   ;;  %v601_v7 = vadd.f32 %v600_v59, %v591_v1 }
 0x276   :  { %v611_v13 = vadd.f32 %v610_v40, %v601_v7 }
 0x278   :  { %v621_v41 = vadd.f32 %v620_v29, %v611_v13  ;;  %1344 = vset.pattern.permute.xlu1 %v1370_v5 }
 0x279   :  { %1098 = vperm.xlu1 %1344, %v1095_v30  }
 0x27a   :  { %v631_v44 = vadd.f32 %v630_v46, %v621_v41 }
 0x27b   :  { %v644_v11 = vpop.permute.xlu1 %643 }
 0x27c   :  { %v641_v56 = vadd.f32 %v640_v53, %v631_v44  ;;  %v650_v31 = vmul.f32 %v649_v45, %v644_v11 }
 0x27e   :  { %v651_v50 = vadd.f32 %v650_v31, %v641_v56 }
 0x280   :  { %v654_v26 = vpop.permute.xlu1 %653 }
 0x281   :  { %v660_v42 = vmul.f32 %v659_v47, %v654_v26 }
 0x283   :  { %v661_v51 = vadd.f32 %v660_v42, %v651_v50 }
 0x285   :  { %v674_v15 = vpop.permute.xlu1 %673  ;;  %v671_v20 = vadd.f32 %v670_v54, %v661_v51 }
 0x286   :  { %v680_v23 = vmul.f32 %v679_v18, %v674_v15 }
 0x288   :  { %v681_v19 = vadd.f32 %v680_v23, %v671_v20 }
 0x28a   :  { %v684_v17 = vpop.permute.xlu1 %683 }
 0x28b   :  { %v690_v32 = vmul.f32 %v689_v6, %v684_v17 }
 0x28d   :  { %v691_v55 = vadd.f32 %v690_v32, %v681_v19 }
 0x28f   :  { %v704_v8 = vpop.permute.xlu1 %703  ;;  %v701_v12 = vadd.f32 %v700_v58, %v691_v55 }
 0x290   :  { %v710_v36 = vmul.f32 %v709_v38, %v704_v8 }
 0x292   :  { %v711_v48 = vadd.f32 %v710_v36, %v701_v12 }
 0x294   :  { %v714_v37 = vpop.permute.xlu1 %713 }
 0x295   :  { %v720_v61 = vmul.f32 %v719_v60, %v714_v37 }
 0x297   :  { %v721_v0 = vadd.f32 %v720_v61, %v711_v48 }
 0x299   :  { %v728_v52 = vadd.f32 %v726_v63, %v721_v0 }
 0x29b   :  { %v729_v1 = vmax.f32 %v728_v52, 0.0 }
 0x29d   :  { %v730_v59 = vadd.f32 %v729_v1, %v1728_v33 }
 0x29f   :  { %v1890_v3 = vmax.f32 %v730_v59, 0.0 }
 0x2a1   :  { %732 = vrot.lane.b32.xlu0 %v1890_v3, %s1387_s14 }
 0x2a5   :  { %855 = vperm.xlu0 %1326, %v1760_v57  }
 0x2a9   :  { %1329 = vset.pattern.permute.xlu0 %v1379_v16  ;;  %v755_v16 = vpop.permute.xlu1 %754 }
 0x2aa   :  { %894 = vperm.xlu0 %1329, %v1760_v57  }
 0x2ad   :  { %v746_v2 = vpop.permute.xlu1 %745 }
 0x2ae   :  { %1332 = vset.pattern.permute.xlu0 %v1385_v24  ;;  %v751_v30 = vrot.slane %v746_v2, %v1595_v27 }
 0x2af   :  { %933 = vperm.xlu0 %1332, %v1760_v57   ;;  %v768_v57 = vpop.permute.xlu0 %767 }
 0x2b0   :  { %v773_v28 = vrot.slane %v768_v57, %v1595_v27 }
 0x2b1   :  { %v781_v33 = vpop.permute.xlu1 %780 }
 0x2b2   :  { %v786_v39 = vrot.slane %v781_v33, %v1595_v27 }
 0x2b3   :  { %1335 = vset.pattern.permute.xlu0 %v1370_v5 }
 0x2b4   :  { %996 = vperm.xlu0 %1335, %v1841_v22  }
 0x2b5   :  { %v794_v24 = vpop.permute.xlu1 %793 }
 0x2b8   :  { %1338 = vset.pattern.permute.xlu0 %v1374_v9  ;;  %v735_v9 = vsel %vm734_vm4, 1, %v1370_v5 }
 0x2b9   :  { %1044 = vperm.xlu0 %1338, %v1841_v22   ;;  %v807_v21 = vpop.permute.xlu1 %806  ;;  %v820_v22 = vpop.permute.xlu0 %819  ;;  %v739_v7 = vrot.slane %v735_v9, %v1595_v27 }
 0x2ba   :  { %v825_v45 = vrot.slane %v820_v22, %v1595_v27  ;;  %v812_v56 = vrot.slane %v807_v21, %v1595_v27 }
 0x2bb   :  { %vm740_vm5 = vcmp.eq.s32.totalorder %v739_v7, 1 }
 0x2bd   :  { %1341 = vset.pattern.permute.xlu0 %v1370_v5  ;;  %v833_v14 = vpop.permute.xlu1 %832  ;;  %v799_v5 = vrot.slane %v794_v24, %v1595_v27 }
 0x2be   :  { %963 = vperm.xlu0 %1341, %v1861_v10   ;;  %v760_v10 = vrot.slane %v755_v16, %v1595_v27  ;;  %v838_v49 = vrot.slane %v833_v14, %v1595_v27 }
 0x2c1   :  { %v846_v40 = vpop.permute.xlu1 %845 }
 0x2c2   :  { %984 = vperm.xlu0 %1341, %v981_v62   ;;  %v851_v32 = vrot.slane %v846_v40, %v1595_v27 }
 0x2c4   :  { %v852_v60 = vmul.f32 %v851_v32, %v1890_v3 }
 0x2c5   :  { %v869_v43 = vpop.permute.xlu1 %868 }
 0x2c6   :  { %v874_v4 = vrot.slane %v869_v43, %v1595_v27 }
 0x2c8   :  { %v875_v37 = vmul.f32 %v874_v4, %v1890_v3 }
 0x2c9   :  { %v882_v35 = vpop.permute.xlu1 %881 }
 0x2ca   :  { %v887_v38 = vrot.slane %v882_v35, %v1595_v27  ;;  %v877_v16 = vrot.slane %v875_v37, 2 }
 0x2cc   :  { %v888_v63 = vmul.f32 %v887_v38, %v1890_v3 }
 0x2cd   :  { %v908_v19 = vpop.permute.xlu1 %907 }
 0x2ce   :  { %v913_v0 = vrot.slane %v908_v19, %v1595_v27  ;;  %v890_v21 = vrot.slane %v888_v63, 3 }
 0x2d0   :  { %v914_v57 = vmul.f32 %v913_v0, %v1890_v3 }
 0x2d1   :  { %v921_v61 = vpop.permute.xlu1 %920 }
 0x2d2   :  { %v926_v2 = vrot.slane %v921_v61, %v1595_v27 }
 0x2d4   :  { %v927_v7 = vmul.f32 %v926_v2, %v1890_v3 }
 0x313   :  { %v733_v13 = vpop.permute.xlu0 %732 }
 0x314   :  { %v741_v29 = vsel %vm740_vm5, %v733_v13, 0.0 }
 0x315   :  { %v761_v41 = vmul.f32 %v760_v10, %v741_v29  ;;  %v774_v46 = vmul.f32 %v773_v28, %v741_v29  ;;  %v752_v44 = vmul.f32 %v751_v30, %v741_v29  ;;  %v787_v11 = vmul.f32 %v786_v39, %v741_v29 }
 0x316   :  { %v800_v26 = vmul.f32 %v799_v5, %v741_v29  ;;  %v813_v51 = vmul.f32 %v812_v56, %v741_v29  ;;  %v826_v18 = vmul.f32 %v825_v45, %v741_v29  ;;  %v839_v6 = vmul.f32 %v838_v49, %v741_v29 }
 0x317   :  { %v763_v53 = vrot.slane %v761_v41, 1  ;;  %v776_v47 = vrot.slane %v774_v46, 2  ;;  %v789_v50 = vrot.slane %v787_v11, 3  ;;  %v916_v28 = vrot.slane %v914_v57, 5  ;;  %v949_v41 = vpop.permute.xlu1 %948 }
 0x318   :  { %v802_v15 = vrot.slane %v800_v26, 4  ;;  %v815_v23 = vrot.slane %v813_v51, 5  ;;  %v828_v34 = vrot.slane %v826_v18, 6  ;;  %v841_v58 = vrot.slane %v839_v6, 7 }
 0x319   :  { %v765_v31 = vadd.f32 %v763_v53, %v752_v44  ;;  %v929_v30 = vrot.slane %v927_v7, 6  ;;  %v954_v46 = vrot.slane %v949_v41, %v1595_v27 }
 0x31b   :  { %v778_v42 = vadd.f32 %v776_v47, %v765_v31  ;;  %v1006_v45 = vpop.permute.xlu1 %1005 }
 0x31c   :  { %v1011_v26 = vrot.slane %v1006_v45, %v1595_v27 }
 0x31d   :  { %v791_v54 = vadd.f32 %v789_v50, %v778_v42 }
 0x31e   :  { %v1012_v50 = vmul.f32 %v1011_v26, %v1890_v3 }
 0x31f   :  { %v804_v20 = vadd.f32 %v802_v15, %v791_v54  ;;  %v1019_v56 = vpop.permute.xlu1 %1018 }
 0x320   :  { %v1024_v42 = vrot.slane %v1019_v56, %v1595_v27  ;;  %v1014_v15 = vrot.slane %v1012_v50, 1 }
 0x321   :  { %v817_v17 = vadd.f32 %v815_v23, %v804_v20 }
 0x322   :  { %v1025_v18 = vmul.f32 %v1024_v42, %v1890_v3 }
 0x323   :  { %v830_v55 = vadd.f32 %v828_v34, %v817_v17  ;;  %v1032_v31 = vpop.permute.xlu1 %1031 }
 0x324   :  { %v856_v8 = vpop.permute.xlu0 %855  ;;  %v1037_v20 = vrot.slane %v1032_v31, %v1595_v27  ;;  %v1027_v34 = vrot.slane %v1025_v18, 2 }
 0x325   :  { %v843_v12 = vadd.f32 %v841_v58, %v830_v55  ;;  %v861_v36 = vrot.slane %v856_v8, %v1595_v27 }
 0x326   :  { %v1038_v19 = vmul.f32 %v1037_v20, %v1890_v3 }
 0x327   :  { %v862_v48 = vmul.f32 %v861_v36, %v1890_v3  ;;  %v853_v52 = vadd.f32 %v852_v60, %v843_v12  ;;  %v1058_v51 = vpop.permute.xlu1 %1057 }
 0x328   :  { %v1040_v58 = vrot.slane %v1038_v19, 3  ;;  %v1063_v8 = vrot.slane %v1058_v51, %v1595_v27 }
 0x329   :  { %v864_v1 = vrot.slane %v862_v48, 1  ;;  %v895_v59 = vpop.permute.xlu0 %894 }
 0x32a   :  { %v900_v62 = vrot.slane %v895_v59, %v1595_v27  ;;  %v1064_v36 = vmul.f32 %v1063_v8, %v1890_v3 }
 0x32b   :  { %v866_v33 = vadd.f32 %v864_v1, %v853_v52  ;;  %v1071_v17 = vpop.permute.xlu1 %1070 }
 0x32c   :  { %v901_v24 = vmul.f32 %v900_v62, %v1890_v3  ;;  %v1076_v60 = vrot.slane %v1071_v17, %v1595_v27  ;;  %v1066_v63 = vrot.slane %v1064_v36, 5 }
 0x32d   :  { %v879_v14 = vadd.f32 %v877_v16, %v866_v33 }
 0x32e   :  { %v903_v9 = vrot.slane %v901_v24, 4  ;;  %v934_v22 = vpop.permute.xlu0 %933  ;;  %v1077_v0 = vmul.f32 %v1076_v60, %v1890_v3 }
 0x32f   :  { %v892_v40 = vadd.f32 %v890_v21, %v879_v14  ;;  %v939_v10 = vrot.slane %v934_v22, %v1595_v27  ;;  %v973_v55 = vpop.permute.xlu1 %972 }
 0x330   :  { %v1079_v62 = vrot.slane %v1077_v0, 6  ;;  %v978_v16 = vrot.slane %v973_v55, %v1595_v27 }
 0x331   :  { %v905_v13 = vadd.f32 %v903_v9, %v892_v40  ;;  %v940_v29 = vmul.f32 %v939_v10, %v1890_v3 }
 0x333   :  { %v918_v39 = vadd.f32 %v916_v28, %v905_v13  ;;  %v942_v5 = vrot.slane %v940_v29, 7  ;;  %v997_v47 = vpop.permute.xlu0 %996  ;;  %v1084_v48 = vpop.permute.xlu1 %1083 }
 0x334   :  { %v1002_v49 = vrot.slane %v997_v47, %v1595_v27  ;;  %v1089_v52 = vrot.slane %v1084_v48, %v1595_v27 }
 0x335   :  { %v931_v43 = vadd.f32 %v929_v30, %v918_v39  ;;  %v1123_v39 = vld [vmem:[%s1992_s18] sm:$0xff] }
 0x336   :  { %v1003_v35 = vmul.f32 %v1002_v49, %v1890_v3  ;;  %v1090_v2 = vmul.f32 %v1089_v52, %v1890_v3 }
 0x337   :  { %v944_v44 = vadd.f32 %v942_v5, %v931_v43  ;;  %v1099_v57 = vpop.permute.xlu1 %1098 }
 0x338   :  { %v1045_v54 = vpop.permute.xlu0 %1044  ;;  %v1016_v23 = vadd.f32 %v1014_v15, %v1003_v35  ;;  %v1092_v9 = vrot.slane %v1090_v2, 7  ;;  %v1104_v10 = vrot.slane %v1099_v57, %v1595_v27 }
 0x339   :  { %v955_v53 = vadd.f32 %v954_v46, %v944_v44  ;;  %v1050_v6 = vrot.slane %v1045_v54, %v1595_v27  ;;  %v1388_v46 = vmov 0.0  }
 0x33a   :  { %v1029_v32 = vadd.f32 %v1027_v34, %v1016_v23  ;;  %1226 = vmatprep.subr.mxu0 %v1388_v46  ;;  %1228 = vmatprep.mubr.msk.f32.mxu0 %vm1389_vm6, %v1388_v46 }
 0x33b   :  { %v956_v11 = vmax.f32 %v955_v53, 0.0  ;;  %v1051_v4 = vmul.f32 %v1050_v6, %v1890_v3  ;;  %1227 = vmatpush3.msra.mxu0 %v1123_v39  ;;  %v1222_v53 = vld [vmem:[%s1993_s19] ss:$0 sm:$0xff] }
 0x33c   :  { %v1042_v38 = vadd.f32 %v1040_v58, %v1029_v32 }
 0x33d   :  { %957 = vrot.lane.b32.xlu0 %v956_v11, %s1387_s14  ;;  %v1053_v12 = vrot.slane %v1051_v4, 4  ;;  %v964_v37 = vpop.permute.xlu0 %963  ;;  %v979_v7 = vmul.f32 %v978_v16, %v956_v11 }
 0x33e   :  { %v969_v24 = vrot.slane %v964_v37, %v1595_v27 }
 0x33f   :  { %v1055_v61 = vadd.f32 %v1053_v12, %v1042_v38 }
 0x341   :  { %v1068_v1 = vadd.f32 %v1066_v63, %v1055_v61  ;;  %v985_v59 = vpop.permute.xlu0 %984 }
 0x342   :  { %v990_v28 = vrot.slane %v985_v59, %v1595_v27 }
 0x343   :  { %v1081_v33 = vadd.f32 %v1079_v62, %v1068_v1 }
 0x345   :  { %v1094_v40 = vadd.f32 %v1092_v9, %v1081_v33 }
 0x347   :  { %v1105_v30 = vadd.f32 %v1104_v10, %v1094_v40 }
 0x3af   :  { %v958_v21 = vpop.permute.xlu0 %957 }
 0x3b0   :  { %v959_v14 = vsel %vm734_vm4, %v958_v21, 0.0 }
 0x3b1   :  { %v970_v22 = vmul.f32 %v969_v24, %v959_v14 }
 0x3b3   :  { %v980_v13 = vadd.f32 %v979_v7, %v970_v22 }
 0x3b5   :  { %v991_v29 = vadd.f32 %v990_v28, %v980_v13 }
 0x3b7   :  { %v992_v3 = vmax.f32 %v991_v29, 0.0 }
 0x3b9   :  { %v1106_v41 = vadd.f32 %v1105_v30, %v992_v3 }
 0x3bb   :  { %v1107_v25 = vmax.f32 %v1106_v41, 0.0 }
 0x3bd   :  { %1108 = vst [vmem:[#allocation2] sm:$0x1] %v1107_v25 }
 0x3c4   :  { %v1221_v43 = vld [vmem:[#allocation2] ss:$0 sm:$0xff] }
 0x3c5   :  { %v1109_v5 = vld [vmem:[#allocation2] sm:$0x1]  ;;  %1118 = vrot.lane.b32.xlu1 %v1221_v43, %s1390_s1 }
 0x3c6   :  { %1111 = vst.msk [vmem:[#allocation3] sm:$0x1] %vm1110_vm7, %v1109_v5 }
 0x437   :  { %v1119_v27 = vpop.permute.xlu1 %1118 }
 0x438   :  { %1121 = vst.msk [vmem:[#allocation3 + $0x1] sm:$0x1] %vm1110_vm7, %v1119_v27 }
 0x43f   :  { %v1122_v44 = vld [vmem:[#allocation3] sm:$0x3] }
 0x440   :  { %1229 = vmatmul.mubr.msk.f32.vlgmr.msra.gmra.mrb[0].mxu0 %vm1131_vm8, %v1122_v44 }
 0x513   :  { %v1201_v11 = vpop.f32.mrb[0].mxu0 }
 0x514   :  { %v1202_v45 = vadd.f32 %v1222_v53, %v1201_v11  ;;  %v1230_v56 = vpop.f32.mrb[1].mxu0 }
 0x516   :  { %1206 = vst.msk [vmem:[#allocation7] sm:$0x3] %vm1205_vm9, %v1202_v45 }
 0x517   :  { %1356 = shalt.err (!%p1353_p4)
}
 0x518   :  { %s1357_s7 = scalar_lea.hbm %s1994_s20, 32 }
 0x519   :  { %p1358_p5 = scmp.ne.s32.totalorder %s1994_s20, %s1357_s7  ;;  %p1361_p6 = scmp.lt.u32.totalorder %s1357_s7, %s1994_s20 }
 0x51b   :  { %p1363_p7 = pnand %p1361_p6, %p1358_p5 }
 0x51d   :  { %1366 = shalt.err (!%p1363_p7)
}
 0x51e   :  { %1216 = dma.vmem_to_hbm [thread:$0]  %s1214_s24, 32, %s1994_s20, [#allocation8]  }
 0x51f   :  { %1367 = dma.done.wait [#allocation8], 32  }
 0x520   :  { %1368 = vsyncadd [#allocation8], 4294967264 }
 0x521   :  { %1220 = vsyncpa [#allocation8], 1 }

</bundles_post_ra>
